<compile_context>
chip_gen: v7x
topology: tpu7x:2x2x1
jax: 0.10.0
libtpu: 0.0.40
codegen_flags: <defaults>
</compile_context>

<pallas_src>
import functools

import jax
import jax.numpy as jnp
from jax.experimental import pallas as pl
from jax.experimental.pallas import tpu as pltpu

BN_EPS = 1e-5
LANES = 128
VMEM_LIMIT = 32 * 1024 * 1024   # explicit scoped-VMEM limit, safe on v5e/v6e/v7x


def _stats_kernel(patches_ref, w_ref, sum_ref, sumsq_ref):
    """Pass 1: accumulate per-output-channel sum and sum-of-squares of conv."""
    @pl.when(pl.program_id(0) == 0)
    def _():
        sum_ref[...] = jnp.zeros_like(sum_ref)
        sumsq_ref[...] = jnp.zeros_like(sumsq_ref)

    acc = jnp.dot(patches_ref[...], w_ref[...],
                  preferred_element_type=jnp.float32)          # (TM, O_pad) MXU, f32 acc
    sum_ref[...] += jnp.sum(acc, axis=0, keepdims=True)
    sumsq_ref[...] += jnp.sum(acc * acc, axis=0, keepdims=True)


def _apply_kernel(patches_ref, w_ref, scale_ref, shift_ref, out_ref):
    """Pass 2: conv tile (recomputed) -> folded BatchNorm FMA -> Mish."""
    acc = jnp.dot(patches_ref[...], w_ref[...],
                  preferred_element_type=jnp.float32)          # (TM, O_pad)
    y = acc * scale_ref[...] + shift_ref[...]                  # one FMA per element
    # Mish: y * tanh(softplus(y)), numerically stable softplus (EUP slot ops).
    sp = jnp.maximum(y, 0.0) + jnp.log1p(jnp.exp(-jnp.abs(y)))
    out_ref[...] = (y * jnp.tanh(sp)).astype(out_ref.dtype)


def _im2col_nhwc(x_nchw, kernel_size, stride, padding):
    """NCHW -> (N*Ho*Wo, K*K*C) patches, columns ordered (kh, kw, c)."""
    n, c, h, w = x_nchw.shape
    k, s, p = kernel_size, stride, padding
    ho = (h + 2 * p - k) // s + 1
    wo = (w + 2 * p - k) // s + 1
    x = jnp.transpose(x_nchw, (0, 2, 3, 1))                    # NHWC
    xp = jnp.pad(x, ((0, 0), (p, p), (p, p), (0, 0)))
    cols = [xp[:, kh:kh + s * ho:s, kw:kw + s * wo:s, :]
            for kh in range(k) for kw in range(k)]
    patches = jnp.concatenate(cols, axis=-1)                   # (N, Ho, Wo, K*K*C)
    return patches.reshape(n * ho * wo, k * k * c), ho, wo


@functools.partial(jax.jit, static_argnames=("kernel_size", "stride", "block_m"))
def conv_forward(x, weight, gamma, beta, *, kernel_size, stride, block_m=256):
    """Equivalent of Conv(in_c, out_c, kernel_size, stride, 'mish').forward(x)."""
    n = x.shape[0]
    out_c = weight.shape[0]
    k = kernel_size
    pad = k // 2

    patches, ho, wo = _im2col_nhwc(x, k, stride, pad)          # (M, K*K*C) f32
    m, ckk = patches.shape

    # Lane-dense output channels; M padded up to the tile size (zero rows are
    # harmless: they add 0 to the sums and we divide by the true M).
    o_pad = ((out_c + LANES - 1) // LANES) * LANES
    tm = block_m                                                # multiple of 8; raise to 512-1024 for large M
    m_pad = ((m + tm - 1) // tm) * tm
    n_tiles = m_pad // tm

    patches = jnp.pad(patches, ((0, m_pad - m), (0, 0))).astype(jnp.bfloat16)
    # weight (O,C,K,K) -> (K,K,C,O) -> (K*K*C, O_pad), bf16 for the MXU.
    w_mat = jnp.transpose(weight, (2, 3, 1, 0)).reshape(ckk, out_c)
    w_mat = jnp.pad(w_mat, ((0, 0), (0, o_pad - out_c))).astype(jnp.bfloat16)

    # ---------- pass 1: global per-channel batch statistics ----------
    col_sum, col_sumsq = pl.pallas_call(
        _stats_kernel,
        out_shape=(jax.ShapeDtypeStruct((1, o_pad), jnp.float32),
                   jax.ShapeDtypeStruct((1, o_pad), jnp.float32)),
        grid=(n_tiles,),
        in_specs=[pl.BlockSpec((tm, ckk), lambda i: (i, 0)),
                  pl.BlockSpec((ckk, o_pad), lambda i: (0, 0))],
        out_specs=(pl.BlockSpec((1, o_pad), lambda i: (0, 0)),
                   pl.BlockSpec((1, o_pad), lambda i: (0, 0))),
        compiler_params=pltpu.CompilerParams(
            dimension_semantics=("arbitrary",),          # resident accumulators
            vmem_limit_bytes=VMEM_LIMIT),
        cost_estimate=pl.CostEstimate(
            flops=2 * m_pad * ckk * o_pad,
            transcendentals=0,
            bytes_accessed=patches.size * 2 + w_mat.size * 2 + 2 * o_pad * 4),
    )(patches, w_mat)

    # Fold BN (training-mode batch stats, biased variance) + affine into one FMA.
    mean = col_sum / m
    var = jnp.maximum(col_sumsq / m - mean * mean, 0.0)
    scale = jnp.pad(gamma, (0, o_pad - out_c), constant_values=1.0).reshape(1, o_pad)
    scale = scale * jax.lax.rsqrt(var + BN_EPS)
    shift = jnp.pad(beta, (0, o_pad - out_c)).reshape(1, o_pad) - mean * scale

    # ---------- pass 2: conv -> BN FMA -> Mish, lane-dense stores ----------
    out_flat = pl.pallas_call(
        _apply_kernel,
        out_shape=jax.ShapeDtypeStruct((m_pad, o_pad), jnp.float32),
        grid=(n_tiles,),
        in_specs=[pl.BlockSpec((tm, ckk), lambda i: (i, 0)),
                  pl.BlockSpec((ckk, o_pad), lambda i: (0, 0)),
                  pl.BlockSpec((1, o_pad), lambda i: (0, 0)),
                  pl.BlockSpec((1, o_pad), lambda i: (0, 0))],
        out_specs=pl.BlockSpec((tm, o_pad), lambda i: (i, 0)),
        compiler_params=pltpu.CompilerParams(
            dimension_semantics=("parallel",),           # shards M-tiles across TCs
            vmem_limit_bytes=VMEM_LIMIT),
        cost_estimate=pl.CostEstimate(
            flops=2 * m_pad * ckk * o_pad + 4 * m_pad * o_pad,
            transcendentals=3 * m_pad * o_pad,
            bytes_accessed=patches.size * 2 + w_mat.size * 2 + m_pad * o_pad * 4),
    )(patches, w_mat, scale, shift)

    # (M, O_pad) -> public NCHW layout, drop the channel / row padding.
    out = out_flat[:m, :out_c].reshape(n, ho, wo, out_c).transpose(0, 3, 1, 2)
    return out


def _reference(x, weight, gamma, beta, kernel_size, stride, conv_dtype):
    pad = kernel_size // 2
    conv = jax.lax.conv_general_dilated(
        x.astype(conv_dtype), weight.astype(conv_dtype),
        window_strides=(stride, stride),
        padding=[(pad, pad), (pad, pad)],
        dimension_numbers=("NCHW", "OIHW", "NCHW"),
        preferred_element_type=jnp.float32)
    mean = conv.mean(axis=(0, 2, 3), keepdims=True)
    var = ((conv - mean) ** 2).mean(axis=(0, 2, 3), keepdims=True)
    y = (conv - mean) / jnp.sqrt(var + BN_EPS)
    y = y * gamma.reshape(1, -1, 1, 1) + beta.reshape(1, -1, 1, 1)
    return y * jnp.tanh(jax.nn.softplus(y))


if __name__ == "__main__":
    # Conv(in_channels=4, out_channels=8, kernel_size=3, stride=1, 'mish')
    N, C_IN, H, W = 2, 4, 16, 16
    C_OUT, KSIZE, STRIDE = 8, 3, 1

    key = jax.random.PRNGKey(0)
    kx, kw_, kg, kb = jax.random.split(key, 4)
    x = jax.random.normal(kx, (N, C_IN, H, W), dtype=jnp.float32)
    weight = 0.1 * jax.random.normal(kw_, (C_OUT, C_IN, KSIZE, KSIZE), jnp.float32)
    gamma = 1.0 + 0.1 * jax.random.normal(kg, (C_OUT,), jnp.float32)
    beta = 0.1 * jax.random.normal(kb, (C_OUT,), jnp.float32)

    out = conv_forward(x, weight, gamma, beta, kernel_size=KSIZE, stride=STRIDE)
    jax.block_until_ready(out)
    assert out.shape == (N, C_OUT, H, W)

    # Tight check vs a reference that quantizes conv inputs the same way
    # (bf16 into the MXU, f32 accumulation); loose check vs the pure-f32 module.
    ref_bf16 = _reference(x, weight, gamma, beta, KSIZE, STRIDE, jnp.bfloat16)
    ref_f32 = _reference(x, weight, gamma, beta, KSIZE, STRIDE, jnp.float32)
    assert jnp.allclose(out, ref_bf16, rtol=2e-3, atol=2e-3), "mismatch vs bf16 reference"
    assert jnp.allclose(out, ref_f32, rtol=5e-2, atol=5e-2), "mismatch vs f32 reference"

    print("KERNEL_OK")
</pallas_src>

<mosaic_0001>
module attributes {stable_mosaic.version = 11 : i64} {
  func.func @_stats_kernel(%arg0: i32, %arg1: memref<256x36xbf16, #tpu.memory_space<vmem>>, %arg2: memref<36x128xbf16, #tpu.memory_space<vmem>>, %arg3: memref<1x128xf32, #tpu.memory_space<vmem>>, %arg4: memref<1x128xf32, #tpu.memory_space<vmem>>) attributes {dimension_semantics = [#tpu.dimension_semantics<arbitrary>], iteration_bounds = array<i64: 2>, scalar_prefetch = 0 : i64, scratch_operands = 0 : i64, tpu.core_type = #tpu.core_type<tc>, window_params = [{transform_indices = @transform_0, window_bounds = array<i64: 256, 36>}, {pipeline_mode = #tpu.pipeline_mode<synchronous>, transform_indices = @transform_1, window_bounds = array<i64: 36, 128>}, {pipeline_mode = #tpu.pipeline_mode<synchronous>, transform_indices = @transform_2, window_bounds = array<i64: 1, 128>}, {pipeline_mode = #tpu.pipeline_mode<synchronous>, transform_indices = @transform_3, window_bounds = array<i64: 1, 128>}]} {
    %c0_i32 = arith.constant 0 : i32
    %0 = arith.cmpi eq, %arg0, %c0_i32 : i32
    %1 = arith.extui %0 : i1 to i32
    %c0_i32_0 = arith.constant 0 : i32
    %2 = arith.cmpi ne, %1, %c0_i32_0 : i32
    scf.if %2 {
      %cst_14 = arith.constant 0.000000e+00 : f32
      %17 = vector.broadcast %cst_14 : f32 to vector<1x128xf32>
      %c0_15 = arith.constant 0 : index
      %c0_16 = arith.constant 0 : index
      %18 = vector.load %arg3[%c0_15, %c0_16] : memref<1x128xf32, #tpu.memory_space<vmem>>, vector<1x128xf32>
      tpu.vector_store %arg3[%c0_15, %c0_16], %17 {strides = array<i32>} : memref<1x128xf32, #tpu.memory_space<vmem>>, vector<1x128xf32>,
      %cst_17 = arith.constant 0.000000e+00 : f32
      %19 = vector.broadcast %cst_17 : f32 to vector<1x128xf32>
      %c0_18 = arith.constant 0 : index
      %c0_19 = arith.constant 0 : index
      %20 = vector.load %arg4[%c0_18, %c0_19] : memref<1x128xf32, #tpu.memory_space<vmem>>, vector<1x128xf32>
      tpu.vector_store %arg4[%c0_18, %c0_19], %19 {strides = array<i32>} : memref<1x128xf32, #tpu.memory_space<vmem>>, vector<1x128xf32>,
    } else {
    }
    %c0 = arith.constant 0 : index
    %c0_1 = arith.constant 0 : index
    %3 = vector.load %arg1[%c0, %c0_1] : memref<256x36xbf16, #tpu.memory_space<vmem>>, vector<256x36xbf16>
    %c0_2 = arith.constant 0 : index
    %c0_3 = arith.constant 0 : index
    %4 = vector.load %arg2[%c0_2, %c0_3] : memref<36x128xbf16, #tpu.memory_space<vmem>>, vector<36x128xbf16>
    %cst = arith.constant dense<0.000000e+00> : vector<256x128xf32>
    %5 = tpu.matmul %3, %4, %cst {dimension_numbers = #tpu.dot_dimension_numbers<[1], [0], [0], [1], [0, 0, 1, 1], [], []>} : vector<256x36xbf16>, vector<36x128xbf16>, vector<256x128xf32> -> vector<256x128xf32>
    %c0_4 = arith.constant 0 : index
    %c0_5 = arith.constant 0 : index
    %6 = vector.load %arg3[%c0_4, %c0_5] : memref<1x128xf32, #tpu.memory_space<vmem>>, vector<1x128xf32>
    %cst_6 = arith.constant dense<0.000000e+00> : vector<128xf32>
    %7 = vector.multi_reduction <add>, %5, %cst_6 [0] : vector<256x128xf32> to vector<128xf32>
    %8 = vector.shape_cast %7 : vector<128xf32> to vector<1x128xf32>
    %9 = arith.addf %6, %8 : vector<1x128xf32>
    %c0_7 = arith.constant 0 : index
    %c0_8 = arith.constant 0 : index
    %10 = vector.load %arg3[%c0_7, %c0_8] : memref<1x128xf32, #tpu.memory_space<vmem>>, vector<1x128xf32>
    tpu.vector_store %arg3[%c0_7, %c0_8], %9 {strides = array<i32>} : memref<1x128xf32, #tpu.memory_space<vmem>>, vector<1x128xf32>,
    %c0_9 = arith.constant 0 : index
    %c0_10 = arith.constant 0 : index
    %11 = vector.load %arg4[%c0_9, %c0_10] : memref<1x128xf32, #tpu.memory_space<vmem>>, vector<1x128xf32>
    %12 = arith.mulf %5, %5 : vector<256x128xf32>
    %cst_11 = arith.constant dense<0.000000e+00> : vector<128xf32>
    %13 = vector.multi_reduction <add>, %12, %cst_11 [0] : vector<256x128xf32> to vector<128xf32>
    %14 = vector.shape_cast %13 : vector<128xf32> to vector<1x128xf32>
    %15 = arith.addf %11, %14 : vector<1x128xf32>
    %c0_12 = arith.constant 0 : index
    %c0_13 = arith.constant 0 : index
    %16 = vector.load %arg4[%c0_12, %c0_13] : memref<1x128xf32, #tpu.memory_space<vmem>>, vector<1x128xf32>
    tpu.vector_store %arg4[%c0_12, %c0_13], %15 {strides = array<i32>} : memref<1x128xf32, #tpu.memory_space<vmem>>, vector<1x128xf32>,
    return
  }
  func.func @transform_0(%arg0: i32) -> (i32, i32) {
    %c0_i32 = arith.constant 0 : i32
    %c0_i32_0 = arith.constant 0 : i32
    return %arg0, %c0_i32 : i32, i32
  }
  func.func @transform_1(%arg0: i32) -> (i32, i32) {
    %c0_i32 = arith.constant 0 : i32
    %c0_i32_0 = arith.constant 0 : i32
    %c0_i32_1 = arith.constant 0 : i32
    return %c0_i32, %c0_i32_0 : i32, i32
  }
  func.func @transform_2(%arg0: i32) -> (i32, i32) {
    %c0_i32 = arith.constant 0 : i32
    %c0_i32_0 = arith.constant 0 : i32
    %c0_i32_1 = arith.constant 0 : i32
    return %c0_i32, %c0_i32_0 : i32, i32
  }
  func.func @transform_3(%arg0: i32) -> (i32, i32) {
    %c0_i32 = arith.constant 0 : i32
    %c0_i32_0 = arith.constant 0 : i32
    %c0_i32_1 = arith.constant 0 : i32
    return %c0_i32, %c0_i32_0 : i32, i32
  }
}

module attributes {stable_mosaic.version = 11 : i64} {
  func.func @_apply_kernel(%arg0: i32, %arg1: memref<256x36xbf16, #tpu.memory_space<vmem>>, %arg2: memref<36x128xbf16, #tpu.memory_space<vmem>>, %arg3: memref<1x128xf32, #tpu.memory_space<vmem>>, %arg4: memref<1x128xf32, #tpu.memory_space<vmem>>, %arg5: memref<256x128xf32, #tpu.memory_space<vmem>>) attributes {dimension_semantics = [#tpu.dimension_semantics<parallel>], iteration_bounds = array<i64: 2>, scalar_prefetch = 0 : i64, scratch_operands = 0 : i64, tpu.core_type = #tpu.core_type<tc>, window_params = [{transform_indices = @transform_0, window_bounds = array<i64: 256, 36>}, {pipeline_mode = #tpu.pipeline_mode<synchronous>, transform_indices = @transform_1, window_bounds = array<i64: 36, 128>}, {pipeline_mode = #tpu.pipeline_mode<synchronous>, transform_indices = @transform_2, window_bounds = array<i64: 1, 128>}, {pipeline_mode = #tpu.pipeline_mode<synchronous>, transform_indices = @transform_3, window_bounds = array<i64: 1, 128>}, {transform_indices = @transform_4, window_bounds = array<i64: 256, 128>}]} {
    %c0 = arith.constant 0 : index
    %c0_0 = arith.constant 0 : index
    %0 = vector.load %arg1[%c0, %c0_0] : memref<256x36xbf16, #tpu.memory_space<vmem>>, vector<256x36xbf16>
    %c0_1 = arith.constant 0 : index
    %c0_2 = arith.constant 0 : index
    %1 = vector.load %arg2[%c0_1, %c0_2] : memref<36x128xbf16, #tpu.memory_space<vmem>>, vector<36x128xbf16>
    %cst = arith.constant dense<0.000000e+00> : vector<256x128xf32>
    %2 = tpu.matmul %0, %1, %cst {dimension_numbers = #tpu.dot_dimension_numbers<[1], [0], [0], [1], [0, 0, 1, 1], [], []>} : vector<256x36xbf16>, vector<36x128xbf16>, vector<256x128xf32> -> vector<256x128xf32>
    %c0_3 = arith.constant 0 : index
    %c0_4 = arith.constant 0 : index
    %3 = vector.load %arg3[%c0_3, %c0_4] : memref<1x128xf32, #tpu.memory_space<vmem>>, vector<1x128xf32>
    %4 = vector.broadcast %3 : vector<1x128xf32> to vector<256x128xf32>
    %5 = arith.mulf %2, %4 : vector<256x128xf32>
    %c0_5 = arith.constant 0 : index
    %c0_6 = arith.constant 0 : index
    %6 = vector.load %arg4[%c0_5, %c0_6] : memref<1x128xf32, #tpu.memory_space<vmem>>, vector<1x128xf32>
    %7 = vector.broadcast %6 : vector<1x128xf32> to vector<256x128xf32>
    %8 = arith.addf %5, %7 : vector<256x128xf32>
    %cst_7 = arith.constant 0.000000e+00 : f32
    %9 = vector.broadcast %cst_7 : f32 to vector<256x128xf32>
    %10 = arith.maximumf %8, %9 : vector<256x128xf32>
    %11 = math.absf %8 : vector<256x128xf32>
    %cst_8 = arith.constant 0.000000e+00 : f32
    %12 = vector.broadcast %cst_8 : f32 to vector<256x128xf32>
    %13 = arith.subf %12, %11 : vector<256x128xf32>
    %14 = math.exp %13 : vector<256x128xf32>
    %15 = math.log1p %14 : vector<256x128xf32>
    %16 = arith.addf %10, %15 : vector<256x128xf32>
    %17 = math.tanh %16 : vector<256x128xf32>
    %18 = arith.mulf %8, %17 : vector<256x128xf32>
    %c0_9 = arith.constant 0 : index
    %c0_10 = arith.constant 0 : index
    %19 = vector.load %arg5[%c0_9, %c0_10] : memref<256x128xf32, #tpu.memory_space<vmem>>, vector<256x128xf32>
    tpu.vector_store %arg5[%c0_9, %c0_10], %18 {strides = array<i32>} : memref<256x128xf32, #tpu.memory_space<vmem>>, vector<256x128xf32>,
    return
  }
  func.func @transform_0(%arg0: i32) -> (i32, i32) {
    %c0_i32 = arith.constant 0 : i32
    %c0_i32_0 = arith.constant 0 : i32
    return %arg0, %c0_i32 : i32, i32
  }
  func.func @transform_1(%arg0: i32) -> (i32, i32) {
    %c0_i32 = arith.constant 0 : i32
    %c0_i32_0 = arith.constant 0 : i32
    %c0_i32_1 = arith.constant 0 : i32
    return %c0_i32, %c0_i32_0 : i32, i32
  }
  func.func @transform_2(%arg0: i32) -> (i32, i32) {
    %c0_i32 = arith.constant 0 : i32
    %c0_i32_0 = arith.constant 0 : i32
    %c0_i32_1 = arith.constant 0 : i32
    return %c0_i32, %c0_i32_0 : i32, i32
  }
  func.func @transform_3(%arg0: i32) -> (i32, i32) {
    %c0_i32 = arith.constant 0 : i32
    %c0_i32_0 = arith.constant 0 : i32
    %c0_i32_1 = arith.constant 0 : i32
    return %c0_i32, %c0_i32_0 : i32, i32
  }
  func.func @transform_4(%arg0: i32) -> (i32, i32) {
    %c0_i32 = arith.constant 0 : i32
    %c0_i32_0 = arith.constant 0 : i32
    return %arg0, %c0_i32 : i32, i32
  }
}

</mosaic_0001>

<bundles_post_ra>
// kernel: conv_forward.2
= control target key start
LH: loop header
LB: loop body
LE: loop exit
PB: predicated region body
PF: predicated region fallthrough
CT: control target
= control target key end

     0   :  { %s821_s12 = smov 0   ;;  %s946_s0 = inlined_call_operand.vmem [shape: bf16[512,36], index: 0, kind: input, shape index: {}]   ;;  %s947_s1 = inlined_call_operand.vmem [shape: bf16[36,128], index: 1, kind: input, shape index: {}]   ;;  %s948_s2 = inlined_call_operand.vmem [shape: f32[1,128], index: 2, kind: output, shape index: {0}]   ;;  %s949_s3 = inlined_call_operand.vmem [shape: f32[1,128], index: 3, kind: output, shape index: {1}]  }
   0x1 LB: > { %s655_s13 = sadd.s32 4294967295, %s798_s12   ;;  %p658_p0 = scmp.ge.s32.totalorder %s798_s12, 1  ;;  %s798_s12 = sphi %s821_s12, %s14_s12  }
   0x2   : > { %p131_p1 = scmp.lt.s32.totalorder %s798_s12, 3 }
   0x4   : > { %p132_p2 = pnand %p658_p0, %p131_p1 }
   0x5   : > { %s659_s14 = sshll.u32 (!%p132_p2), %s655_s13, 5  ;;  %p661_p4 = scmp.ne.s32.totalorder (!%p132_p2), %s655_s13, 0 }
   0x6   : > { %135 = sbr.rel (%p132_p2) target bundleno = 327 (0x147), region = 28  ;;  %p151_p3 = scmp.lt.s32.totalorder (!%p132_p2), %s659_s14, 63 }
   0xd   : > { %s951_s14 = smov (!%p151_p3, %s659_s14), 63  ;;  %160 = sbr.rel (%p661_p4) target bundleno = 20 (0x14), region = 32 }
   0xe   : > { %s660_s15 = sshll.u32 %s951_s14, 2  ;;  %v800_v0 = vmov (!%p661_p4), 0.0  }
   0xf   : > { %s832_s18 = scalar_lea.vmem %s946_s0, %s660_s15  ;;  %161 = vst [vmem:[%s948_s2] sm:$0x1] (!%p661_p4), %v800_v0  ;;  %162 = vst [vmem:[%s949_s3] sm:$0x1] (!%p661_p4), %v800_v0 }
  0x14 PF: > { %v773_v1 = vld [vmem:[%s947_s1] sm:$0xff]   ;;  %v774_v2 = vld [vmem:[%s947_s1 + $0x8] sm:$0xff]   ;;  %vm295_vm0 = vcmask 293888   ;;  %v775_v3 = vld [vmem:[%s947_s1 + $0x10] ss:$0 sps:$4 sm:$0x33]  }
  0x15   : > { %718 = vmatprep.subr.bf16.mxu0 %v773_v1  ;;  %v776_v4 = vld [vmem:[%s832_s18] sm:$0xff]   ;;  %756 = vmatprep.subr.bf16.mxu1 %v773_v1  ;;  %vm344_vm1 = vcmask 1041408   ;;  %v777_v6 = vld [vmem:[%s832_s18 + $0x8] sm:$0xff]   ;;  %v778_v7 = vld [vmem:[%s832_s18 + $0x10] sm:$0xff]  }
  0x16   : > { %719 = vmatpush3.bf16.msra.mxu0 %v773_v1  ;;  %759 = vmatpush3.bf16.msra.mxu1 %v773_v1  ;;  %v346_v5 = vsel %vm344_vm1, %v775_v3, 0  ;;  %v784_v8 = vld [vmem:[%s832_s18 + $0x40] sm:$0xff]   ;;  %v785_v9 = vld [vmem:[%s832_s18 + $0x48] sm:$0xff]   ;;  %v786_v10 = vld [vmem:[%s832_s18 + $0x50] sm:$0xff]  }
  0x17   : > { %720 = vmatprep.subr.bf16.mxu0 %v774_v2  ;;  %724 = vmatprep.mubr.msk.bf16.mxu0 %vm295_vm0, %v776_v4  ;;  %v779_v11 = vld [vmem:[%s832_s18 + $0x18] sm:$0xff]   ;;  %v780_v13 = vld [vmem:[%s832_s18 + $0x20] sm:$0xff]   ;;  %v781_v15 = vld [vmem:[%s832_s18 + $0x28] sm:$0xff]  }
  0x18   : > { %757 = vmatprep.subr.bf16.mxu1 %v774_v2  ;;  %740 = vmatprep.mubr.msk.bf16.mxu1 %vm295_vm0, %v784_v8  ;;  %v787_v12 = vld [vmem:[%s832_s18 + $0x58] sm:$0xff]   ;;  %v788_v14 = vld [vmem:[%s832_s18 + $0x60] sm:$0xff]   ;;  %v789_v16 = vld [vmem:[%s832_s18 + $0x68] sm:$0xff]  }
  0x19   : > { %v782_v17 = vld [vmem:[%s832_s18 + $0x30] sm:$0xff]   ;;  %v783_v19 = vld [vmem:[%s832_s18 + $0x38] sm:$0xff]  }
  0x1a   : > { %721 = vmatpush3.bf16.msra.mxu0 %v774_v2  ;;  %760 = vmatpush3.bf16.msra.mxu1 %v774_v2  ;;  %v790_v18 = vld [vmem:[%s832_s18 + $0x70] sm:$0xff]   ;;  %v791_v20 = vld [vmem:[%s832_s18 + $0x78] sm:$0xff]  }
  0x1b   : > { %762 = vmatprep.subr.msk.bf16.mxu0 %vm344_vm1, %v775_v3  ;;  %763 = vmatprep.subr.msk.bf16.mxu1 %vm344_vm1, %v775_v3 }
  0x1e   : > { %723 = vmatpush3.bf16.msra.mxu0 %v346_v5  ;;  %761 = vmatpush3.bf16.msra.mxu1 %v346_v5 }
  0x21   : > { %725 = vmatmul.mubr.msk.bf16.vlgmr.msra.gmra.mrb[0].mxu0 %vm295_vm0, %v777_v6  ;;  %741 = vmatmul.mubr.msk.bf16.vlgmr.msra.gmra.mrb[0].mxu1 %vm295_vm0, %v785_v9 }
  0x22   : > { %728 = vmatprep.mubr.msk.bf16.mxu0 %vm295_vm0, %v778_v7  ;;  %744 = vmatprep.mubr.msk.bf16.mxu1 %vm295_vm0, %v786_v10 }
  0x29   : > { %729 = vmatmul.mubr.msk.bf16.gmra.mrb[4].mxu0 %vm295_vm0, %v779_v11  ;;  %745 = vmatmul.mubr.msk.bf16.gmra.mrb[4].mxu1 %vm295_vm0, %v787_v12 }
  0x2a   : > { %732 = vmatprep.mubr.msk.bf16.mxu0 %vm295_vm0, %v780_v13  ;;  %748 = vmatprep.mubr.msk.bf16.mxu1 %vm295_vm0, %v788_v14 }
  0x31   : > { %733 = vmatmul.mubr.msk.bf16.gmra.mrb[8].mxu0 %vm295_vm0, %v781_v15  ;;  %749 = vmatmul.mubr.msk.bf16.gmra.mrb[8].mxu1 %vm295_vm0, %v789_v16 }
  0x32   : > { %736 = vmatprep.mubr.msk.bf16.mxu0 %vm295_vm0, %v782_v17  ;;  %752 = vmatprep.mubr.msk.bf16.mxu1 %vm295_vm0, %v790_v18 }
  0x39   : > { %737 = vmatmul.mubr.msk.bf16.gmra.mrb[12].mxu0 %vm295_vm0, %v783_v19  ;;  %753 = vmatmul.mubr.msk.bf16.gmra.mrb[12].mxu1 %vm295_vm0, %v791_v20 }
  0xf4   : > { %v726_v21 = vpop.f32.mrb[0].mxu0  ;;  %v881_v22 = vpop.f32.mrb[0].mxu1 }
  0xf5   : > { %v382_v23 = vpop.f32.mrb[1].mxu0  ;;  %v883_v24 = vpop.f32.mrb[1].mxu1  ;;  %v552_v32 = vmul.f32 %v726_v21, %v726_v21 }
  0xf6   : > { %v727_v25 = vpop.f32.mrb[2].mxu0  ;;  %v885_v26 = vpop.f32.mrb[2].mxu1  ;;  %v550_v29 = vmul.f32 %v382_v23, %v382_v23 }
  0xf7   : > { %v385_v27 = vpop.f32.mrb[3].mxu0  ;;  %v887_v28 = vpop.f32.mrb[3].mxu1  ;;  %v553_v35 = vmul.f32 %v727_v25, %v727_v25 }
  0xf8   : > { %v510_v30 = vadd.f32 %v385_v27, %v382_v23  ;;  %v551_v31 = vmul.f32 %v385_v27, %v385_v27 }
  0xfa   : > { %v511_v33 = vadd.f32 %v726_v21, %v510_v30  ;;  %v582_v34 = vadd.f32 %v551_v31, %v550_v29 }
  0xfc   : > { %v583_v36 = vadd.f32 %v582_v34, %v552_v32  ;;  %v730_v37 = vpop.f32.mrb[4].mxu0  ;;  %v512_v38 = vadd.f32 %v727_v25, %v511_v33  ;;  %v889_v39 = vpop.f32.mrb[4].mxu1 }
  0xfd   : > { %v398_v40 = vpop.f32.mrb[5].mxu0  ;;  %v891_v41 = vpop.f32.mrb[5].mxu1  ;;  %v556_v52 = vmul.f32 %v730_v37, %v730_v37 }
  0xfe   : > { %v513_v42 = vadd.f32 %v512_v38, %v398_v40  ;;  %v554_v43 = vmul.f32 %v398_v40, %v398_v40  ;;  %v584_v44 = vadd.f32 %v583_v36, %v553_v35  ;;  %v731_v45 = vpop.f32.mrb[6].mxu0  ;;  %v893_v46 = vpop.f32.mrb[6].mxu1  ;;  %v566_v38 = vmul.f32 %v883_v24, %v883_v24 }
  0xff   : > { %v401_v47 = vpop.f32.mrb[7].mxu0  ;;  %v895_v48 = vpop.f32.mrb[7].mxu1  ;;  %v557_v55 = vmul.f32 %v731_v45, %v731_v45 }
 0x100   : > { %v585_v49 = vadd.f32 %v584_v44, %v554_v43  ;;  %v514_v50 = vadd.f32 %v513_v42, %v401_v47  ;;  %v555_v51 = vmul.f32 %v401_v47, %v401_v47  ;;  %v568_v47 = vmul.f32 %v881_v22, %v881_v22 }
 0x102   : > { %v515_v53 = vadd.f32 %v730_v37, %v514_v50  ;;  %v586_v54 = vadd.f32 %v585_v49, %v555_v51  ;;  %v569_v51 = vmul.f32 %v885_v26, %v885_v26 }
 0x104   : > { %v587_v56 = vadd.f32 %v586_v54, %v556_v52  ;;  %v734_v57 = vpop.f32.mrb[8].mxu0  ;;  %v516_v58 = vadd.f32 %v731_v45, %v515_v53  ;;  %v897_v59 = vpop.f32.mrb[8].mxu1  ;;  %v567_v45 = vmul.f32 %v887_v28, %v887_v28 }
 0x105   : > { %v414_v60 = vpop.f32.mrb[9].mxu0  ;;  %v478_v61 = vpop.f32.mrb[9].mxu1  ;;  %v560_v8 = vmul.f32 %v734_v57, %v734_v57 }
 0x106   : > { %v517_v62 = vadd.f32 %v516_v58, %v414_v60  ;;  %v558_v63 = vmul.f32 %v414_v60, %v414_v60  ;;  %v588_v0 = vadd.f32 %v587_v56, %v557_v55  ;;  %v735_v1 = vpop.f32.mrb[10].mxu0  ;;  %v899_v2 = vpop.f32.mrb[10].mxu1 }
 0x107   : > { %v417_v3 = vpop.f32.mrb[11].mxu0  ;;  %v481_v4 = vpop.f32.mrb[11].mxu1  ;;  %v561_v11 = vmul.f32 %v735_v1, %v735_v1 }
 0x108   : > { %v589_v5 = vadd.f32 %v588_v0, %v558_v63  ;;  %v518_v6 = vadd.f32 %v517_v62, %v417_v3  ;;  %v559_v7 = vmul.f32 %v417_v3, %v417_v3 }
 0x10a   : > { %v519_v9 = vadd.f32 %v734_v57, %v518_v6  ;;  %v590_v10 = vadd.f32 %v589_v5, %v559_v7  ;;  %v571_v57 = vmul.f32 %v895_v48, %v895_v48  ;;  %v575_v6 = vmul.f32 %v481_v4, %v481_v4 }
 0x10c   : > { %v591_v12 = vadd.f32 %v590_v10, %v560_v8  ;;  %v738_v13 = vpop.f32.mrb[12].mxu0  ;;  %v520_v14 = vadd.f32 %v735_v1, %v519_v9  ;;  %v754_v15 = vpop.f32.mrb[12].mxu1 }
 0x10d   : > { %v430_v16 = vpop.f32.mrb[13].mxu0  ;;  %v494_v17 = vpop.f32.mrb[13].mxu1  ;;  %v564_v32 = vmul.f32 %v738_v13, %v738_v13 }
 0x10e   : > { %v521_v18 = vadd.f32 %v520_v14, %v430_v16  ;;  %v562_v19 = vmul.f32 %v430_v16, %v430_v16  ;;  %v592_v20 = vadd.f32 %v591_v12, %v561_v11  ;;  %v739_v21 = vpop.f32.mrb[14].mxu0  ;;  %v755_v23 = vpop.f32.mrb[14].mxu1  ;;  %v578_v11 = vmul.f32 %v494_v17, %v494_v17 }
 0x10f   : > { %v433_v25 = vpop.f32.mrb[15].mxu0  ;;  %v497_v27 = vpop.f32.mrb[15].mxu1  ;;  %v565_v35 = vmul.f32 %v739_v21, %v739_v21  ;;  %v580_v16 = vmul.f32 %v754_v15, %v754_v15 }
 0x110   : > { %v593_v29 = vadd.f32 %v592_v20, %v562_v19  ;;  %v522_v30 = vadd.f32 %v521_v18, %v433_v25  ;;  %v563_v31 = vmul.f32 %v433_v25, %v433_v25  ;;  %v579_v14 = vmul.f32 %v497_v27, %v497_v27 }
 0x111   : > { %v581_v19 = vmul.f32 %v755_v23, %v755_v23 }
 0x112   : > { %v523_v33 = vadd.f32 %v738_v13, %v522_v30  ;;  %v594_v34 = vadd.f32 %v593_v29, %v563_v31 }
 0x114   : > { %v595_v36 = vadd.f32 %v594_v34, %v564_v32  ;;  %v524_v37 = vadd.f32 %v739_v21, %v523_v33 }
 0x116   : > { %v525_v40 = vadd.f32 %v524_v37, %v883_v24  ;;  %v596_v42 = vadd.f32 %v595_v36, %v565_v35  ;;  %v570_v24 = vmul.f32 %v891_v41, %v891_v41 }
 0x118   : > { %v597_v43 = vadd.f32 %v596_v42, %v566_v38  ;;  %v526_v44 = vadd.f32 %v525_v40, %v887_v28 }
 0x11a   : > { %v527_v49 = vadd.f32 %v881_v22, %v526_v44  ;;  %v598_v50 = vadd.f32 %v597_v43, %v567_v45  ;;  %v572_v22 = vmul.f32 %v889_v39, %v889_v39 }
 0x11c   : > { %v599_v52 = vadd.f32 %v598_v50, %v568_v47  ;;  %v528_v53 = vadd.f32 %v885_v26, %v527_v49  ;;  %v573_v26 = vmul.f32 %v893_v46, %v893_v46 }
 0x11e   : > { %v529_v54 = vadd.f32 %v528_v53, %v891_v41  ;;  %v600_v55 = vadd.f32 %v599_v52, %v569_v51  ;;  %v574_v41 = vmul.f32 %v478_v61, %v478_v61 }
 0x120   : > { %v601_v56 = vadd.f32 %v600_v55, %v570_v24  ;;  %v530_v28 = vadd.f32 %v529_v54, %v895_v48  ;;  %v576_v48 = vmul.f32 %v897_v59, %v897_v59 }
 0x122   : > { %v531_v58 = vadd.f32 %v889_v39, %v530_v28  ;;  %v602_v60 = vadd.f32 %v601_v56, %v571_v57  ;;  %v577_v39 = vmul.f32 %v899_v2, %v899_v2 }
 0x124   : > { %v603_v62 = vadd.f32 %v602_v60, %v572_v22  ;;  %v532_v63 = vadd.f32 %v893_v46, %v531_v58 }
 0x126   : > { %v533_v0 = vadd.f32 %v532_v63, %v478_v61  ;;  %v604_v1 = vadd.f32 %v603_v62, %v573_v26 }
 0x128   : > { %v605_v3 = vadd.f32 %v604_v1, %v574_v41  ;;  %v534_v5 = vadd.f32 %v533_v0, %v481_v4 }
 0x12a   : > { %v535_v7 = vadd.f32 %v897_v59, %v534_v5  ;;  %v606_v8 = vadd.f32 %v605_v3, %v575_v6 }
 0x12c   : > { %v607_v9 = vadd.f32 %v606_v8, %v576_v48  ;;  %v536_v10 = vadd.f32 %v899_v2, %v535_v7 }
 0x12e   : > { %v537_v46 = vadd.f32 %v536_v10, %v494_v17  ;;  %v608_v12 = vadd.f32 %v607_v9, %v577_v39 }
 0x130   : > { %v609_v61 = vadd.f32 %v608_v12, %v578_v11  ;;  %v538_v13 = vadd.f32 %v537_v46, %v497_v27  ;;  %v509_v27 = vld [vmem:[%s948_s2] sm:$0x1] }
 0x132   : > { %v539_v4 = vadd.f32 %v754_v15, %v538_v13  ;;  %v610_v18 = vadd.f32 %v609_v61, %v579_v14 }
 0x134   : > { %v540_v20 = vadd.f32 %v755_v23, %v539_v4  ;;  %v611_v21 = vadd.f32 %v610_v18, %v580_v16  ;;  %v549_v23 = vld [vmem:[%s949_s3] sm:$0x1] }
 0x136   : > { %v541_v59 = vrot.slane %v540_v20, 4  ;;  %v612_v25 = vadd.f32 %v611_v21, %v581_v19 }
 0x138   : > { %v542_v29 = vadd.f32 %v541_v59, %v540_v20  ;;  %v613_v30 = vrot.slane %v612_v25, 4 }
 0x13a   : > { %v543_v31 = vrot.slane %v542_v29, 2  ;;  %v614_v32 = vadd.f32 %v613_v30, %v612_v25 }
 0x13c   : > { %v544_v33 = vadd.f32 %v543_v31, %v542_v29  ;;  %v615_v2 = vrot.slane %v614_v32, 2 }
 0x13e   : > { %v545_v34 = vrot.slane %v544_v33, 1  ;;  %v616_v17 = vadd.f32 %v615_v2, %v614_v32 }
 0x140   : > { %v546_v35 = vadd.f32 %v545_v34, %v544_v33  ;;  %v617_v15 = vrot.slane %v616_v17, 1 }
 0x142   : > { %v547_v36 = vadd.f32 %v546_v35, %v509_v27  ;;  %v618_v37 = vadd.f32 %v617_v15, %v616_v17 }
 0x144   : > { %548 = vst [vmem:[%s948_s2] sm:$0x1] %v547_v36  ;;  %v619_v38 = vadd.f32 %v618_v37, %v549_v23 }
 0x146   : > { %620 = vst [vmem:[%s949_s3] sm:$0x1] %v619_v38 }
 0x147 PF: > { %s14_s12 = sadd.s32 1, %s798_s12  }
 0x148   : > { %p11_p5 = scmp.ge.s32.totalorder %s14_s12, 4  }
 0x14a   :  { %13 = sbr.rel (!%p11_p5) target bundleno = 1 (0x1), region = 66 }

// kernel: conv_forward.3
= control target key start
LH: loop header
LB: loop body
LE: loop exit
PB: predicated region body
PF: predicated region fallthrough
CT: control target
= control target key end

     0   :  { %s1625_s15 = smov 0   ;;  %s2256_s0 = inlined_call_operand.vmem [shape: bf16[512,36], index: 0, kind: input, shape index: {}]   ;;  %s2257_s1 = inlined_call_operand.vmem [shape: bf16[36,128], index: 1, kind: input, shape index: {}]   ;;  %s2258_s2 = inlined_call_operand.vmem [shape: f32[1,128], index: 2, kind: input, shape index: {}]   ;;  %s2259_s3 = inlined_call_operand.vmem [shape: f32[1,128], index: 3, kind: input, shape index: {}]   ;;  %s2260_s4 = inlined_call_operand.vmem [shape: f32[512,128], index: 4, kind: output, shape index: {}]  }
   0x1 LB: > { %s1258_s16 = sadd.s32 4294967295, %s1598_s15   ;;  %p1262_p0 = scmp.ge.s32.totalorder %s1598_s15, 1  ;;  %s1598_s15 = sphi %s1625_s15, %s14_s15  }
   0x2   : > { %p163_p1 = scmp.lt.s32.totalorder %s1598_s15, 3 }
   0x4   : > { %p164_p2 = pnand %p1262_p0, %p163_p1 }
   0x6   : > { %167 = sbr.rel (%p164_p2) target bundleno = 424 (0x1a8), region = 36 }
   0xd   : > { %v1379_v0 = vld [vmem:[%s2257_s1] sm:$0xff]   ;;  %v1380_v1 = vld [vmem:[%s2257_s1 + $0x8] sm:$0xff]   ;;  %s1263_s21 = sshll.u32 %s1258_s16, 5  ;;  %v1381_v2 = vld [vmem:[%s2257_s1 + $0x10] ss:$0 sps:$4 sm:$0x33]  }
   0xe   : > { %1325 = vmatprep.subr.bf16.mxu0 %v1379_v0  ;;  %1363 = vmatprep.subr.bf16.mxu1 %v1379_v0  ;;  %p190_p3 = scmp.lt.s32.totalorder %s1263_s21, 63  ;;  %vm383_vm0 = vcmask 1041408   ;;  %vm334_vm1 = vcmask 293888   ;;  %v1685_v20 = vld [vmem:[%s2258_s2] ss:$0 sm:$0xff] }
   0xf   : > { %1326 = vmatpush3.bf16.msra.mxu0 %v1379_v0  ;;  %1366 = vmatpush3.bf16.msra.mxu1 %v1379_v0  ;;  %v385_v3 = vsel %vm383_vm0, %v1381_v2, 0  ;;  %v1690_v22 = vld [vmem:[%s2259_s3] ss:$0 sm:$0xff] }
  0x10   : > { %1327 = vmatprep.subr.bf16.mxu0 %v1380_v1  ;;  %1364 = vmatprep.subr.bf16.mxu1 %v1380_v1  ;;  %s2318_s21 = smov (!%p190_p3, %s1263_s21), 63 }
  0x11   : > { %s1264_s24 = sshll.u32 %s2318_s21, 2  ;;  %s1266_s6 = sshll.u32 %s2318_s21, 3 }
  0x12   : > { %s1648_s27 = scalar_lea.vmem %s2256_s0, %s1264_s24  ;;  %s1906_s9 = scalar_lea.vmem %s2260_s4, %s1266_s6 }
  0x13   : > { %1328 = vmatpush3.bf16.msra.mxu0 %v1380_v1  ;;  %1367 = vmatpush3.bf16.msra.mxu1 %v1380_v1  ;;  %v1382_v4 = vld [vmem:[%s1648_s27] sm:$0xff]   ;;  %v1384_v6 = vld [vmem:[%s1648_s27 + $0x8] sm:$0xff]   ;;  %v1386_v8 = vld [vmem:[%s1648_s27 + $0x10] sm:$0xff]  }
  0x14   : > { %1369 = vmatprep.subr.msk.bf16.mxu0 %vm383_vm0, %v1381_v2  ;;  %1370 = vmatprep.subr.msk.bf16.mxu1 %vm383_vm0, %v1381_v2  ;;  %v1383_v5 = vld [vmem:[%s1648_s27 + $0x40] sm:$0xff]   ;;  %v1385_v7 = vld [vmem:[%s1648_s27 + $0x48] sm:$0xff]   ;;  %v1387_v9 = vld [vmem:[%s1648_s27 + $0x50] sm:$0xff]  }
  0x15   : > { %1331 = vmatprep.mubr.msk.bf16.mxu0 %vm334_vm1, %v1382_v4  ;;  %1347 = vmatprep.mubr.msk.bf16.mxu1 %vm334_vm1, %v1383_v5  ;;  %v1388_v10 = vld [vmem:[%s1648_s27 + $0x18] sm:$0xff]   ;;  %v1390_v12 = vld [vmem:[%s1648_s27 + $0x20] sm:$0xff]   ;;  %v1392_v14 = vld [vmem:[%s1648_s27 + $0x28] sm:$0xff]  }
  0x16   : > { %v1389_v11 = vld [vmem:[%s1648_s27 + $0x58] sm:$0xff]   ;;  %v1391_v13 = vld [vmem:[%s1648_s27 + $0x60] sm:$0xff]   ;;  %v1393_v15 = vld [vmem:[%s1648_s27 + $0x68] sm:$0xff]  }
  0x17   : > { %1330 = vmatpush3.bf16.msra.mxu0 %v385_v3  ;;  %1368 = vmatpush3.bf16.msra.mxu1 %v385_v3  ;;  %v1394_v16 = vld [vmem:[%s1648_s27 + $0x30] sm:$0xff]   ;;  %v1396_v18 = vld [vmem:[%s1648_s27 + $0x38] sm:$0xff]  }
  0x18   : > { %v1395_v17 = vld [vmem:[%s1648_s27 + $0x70] sm:$0xff]   ;;  %v1397_v19 = vld [vmem:[%s1648_s27 + $0x78] sm:$0xff]  }
  0x1a   : > { %1332 = vmatmul.mubr.msk.bf16.vlgmr.msra.gmra.mrb[0].mxu0 %vm334_vm1, %v1384_v6  ;;  %1348 = vmatmul.mubr.msk.bf16.vlgmr.msra.gmra.mrb[0].mxu1 %vm334_vm1, %v1385_v7 }
  0x1b   : > { %1335 = vmatprep.mubr.msk.bf16.mxu0 %vm334_vm1, %v1386_v8  ;;  %1351 = vmatprep.mubr.msk.bf16.mxu1 %vm334_vm1, %v1387_v9 }
  0x22   : > { %1336 = vmatmul.mubr.msk.bf16.gmra.mrb[4].mxu0 %vm334_vm1, %v1388_v10  ;;  %1352 = vmatmul.mubr.msk.bf16.gmra.mrb[4].mxu1 %vm334_vm1, %v1389_v11 }
  0x23   : > { %1339 = vmatprep.mubr.msk.bf16.mxu0 %vm334_vm1, %v1390_v12  ;;  %1355 = vmatprep.mubr.msk.bf16.mxu1 %vm334_vm1, %v1391_v13 }
  0x2a   : > { %1340 = vmatmul.mubr.msk.bf16.gmra.mrb[8].mxu0 %vm334_vm1, %v1392_v14  ;;  %1356 = vmatmul.mubr.msk.bf16.gmra.mrb[8].mxu1 %vm334_vm1, %v1393_v15 }
  0x2b   : > { %1343 = vmatprep.mubr.msk.bf16.mxu0 %vm334_vm1, %v1394_v16  ;;  %1359 = vmatprep.mubr.msk.bf16.mxu1 %vm334_vm1, %v1395_v17 }
  0x32   : > { %1344 = vmatmul.mubr.msk.bf16.gmra.mrb[12].mxu0 %vm334_vm1, %v1396_v18  ;;  %1360 = vmatmul.mubr.msk.bf16.gmra.mrb[12].mxu1 %vm334_vm1, %v1397_v19 }
  0xed   : > { %v1333_v21 = vpop.f32.mrb[0].mxu0  ;;  %v1349_v23 = vpop.f32.mrb[0].mxu1 }
  0xee   : > { %v557_v24 = vmul.f32 %v1333_v21, %v1685_v20  ;;  %v573_v25 = vmul.f32 %v1349_v23, %v1685_v20  ;;  %v421_v26 = vpop.f32.mrb[1].mxu0  ;;  %v485_v27 = vpop.f32.mrb[1].mxu1 }
  0xef   : > { %v555_v28 = vmul.f32 %v1685_v20, %v421_v26  ;;  %v571_v29 = vmul.f32 %v1685_v20, %v485_v27  ;;  %v1334_v30 = vpop.f32.mrb[2].mxu0  ;;  %v1350_v31 = vpop.f32.mrb[2].mxu1 }
  0xf0   : > { %v1697_v32 = vadd.f32 %v1690_v22, %v557_v24  ;;  %v1700_v33 = vadd.f32 %v1690_v22, %v573_v25  ;;  %v558_v34 = vmul.f32 %v1334_v30, %v1685_v20  ;;  %v574_v35 = vmul.f32 %v1350_v31, %v1685_v20  ;;  %v424_v36 = vpop.f32.mrb[3].mxu0  ;;  %v488_v37 = vpop.f32.mrb[3].mxu1 }
  0xf1   : > { %v1705_v38 = vadd.f32 %v1690_v22, %v555_v28  ;;  %v1708_v39 = vadd.f32 %v1690_v22, %v571_v29  ;;  %v556_v40 = vmul.f32 %v1685_v20, %v424_v36  ;;  %v572_v41 = vmul.f32 %v1685_v20, %v488_v37 }
  0xf2   : > { %v660_v42 = vand.u32 2147483647, %v1697_v32  ;;  %v676_v43 = vand.u32 2147483647, %v1700_v33  ;;  %v1717_v48 = vadd.f32 %v1690_v22, %v558_v34  ;;  %v1720_v49 = vadd.f32 %v1690_v22, %v574_v35 }
  0xf3   : > { %v658_v44 = vand.u32 2147483647, %v1705_v38  ;;  %v674_v45 = vand.u32 2147483647, %v1708_v39  ;;  %v1723_v52 = vadd.f32 %v1690_v22, %v556_v40  ;;  %v1726_v53 = vadd.f32 %v1690_v22, %v572_v41 }
  0xf4   : > { %v692_v46 = vsub.f32 0.0, %v660_v42  ;;  %v708_v47 = vsub.f32 0.0, %v676_v43  ;;  %v661_v60 = vand.u32 2147483647, %v1717_v48  ;;  %v677_v62 = vand.u32 2147483647, %v1720_v49 }
  0xf5   : > { %v690_v50 = vsub.f32 0.0, %v658_v44  ;;  %v706_v51 = vsub.f32 0.0, %v674_v45  ;;  %v1337_v54 = vpop.f32.mrb[4].mxu0  ;;  %v1353_v55 = vpop.f32.mrb[4].mxu1  ;;  %v659_v63 = vand.u32 2147483647, %v1723_v52 }
  0xf6   : > { %v726_v56 = vmul.f32 1.442695, %v692_v46  ;;  %v758_v57 = vmul.f32 1.442695, %v708_v47  ;;  %v561_v61 = vmul.f32 %v1337_v54, %v1685_v20  ;;  %v437_v0 = vpop.f32.mrb[5].mxu0  ;;  %v693_v1 = vsub.f32 0.0, %v661_v60 }
  0xf7   : > { %v722_v58 = vmul.f32 1.442695, %v690_v50  ;;  %v754_v59 = vmul.f32 1.442695, %v706_v51  ;;  %v675_v2 = vand.u32 2147483647, %v1726_v53  ;;  %v577_v12 = vmul.f32 %v1353_v55, %v1685_v20 }
  0xf8   : > { %1398 = vpow2.f32 %v726_v56  ;;  %v501_v3 = vpop.f32.mrb[5].mxu1  ;;  %v1338_v4 = vpop.f32.mrb[6].mxu0  ;;  %v709_v5 = vsub.f32 0.0, %v677_v62  ;;  %v691_v6 = vsub.f32 0.0, %v659_v63  ;;  %v1734_v7 = vadd.f32 %v1690_v22, %v561_v61 }
  0xf9   : > { %1400 = vpow2.f32 %v758_v57  ;;  %v1354_v8 = vpop.f32.mrb[6].mxu1  ;;  %v1736_v9 = vpop.f32.mrb[7].mxu0  ;;  %v728_v10 = vmul.f32 1.442695, %v693_v1  ;;  %v707_v11 = vsub.f32 0.0, %v675_v2  ;;  %v559_v17 = vmul.f32 %v1685_v20, %v437_v0 }
  0xfa   : > { %1402 = vpow2.f32 %v722_v58  ;;  %v1739_v13 = vpop.f32.mrb[7].mxu1  ;;  %v760_v15 = vmul.f32 1.442695, %v709_v5  ;;  %v724_v16 = vmul.f32 1.442695, %v691_v6  ;;  %v1745_v21 = vadd.f32 %v1690_v22, %v577_v12 }
  0xfb   : > { %1404 = vpow2.f32 %v754_v59  ;;  %v756_v18 = vmul.f32 1.442695, %v707_v11  ;;  %v664_v19 = vand.u32 2147483647, %v1734_v7  ;;  %v1753_v26 = vadd.f32 %v1690_v22, %v559_v17 }
  0xfc   : > { %1406 = vpow2.f32 %v728_v10  ;;  %v575_v27 = vmul.f32 %v1685_v20, %v501_v3  ;;  %v680_v31 = vand.u32 2147483647, %v1745_v21  ;;  %v562_v34 = vmul.f32 %v1338_v4, %v1685_v20 }
  0xfd   : > { %v1747_v23 = vpop.f32.mrb[8].mxu0  ;;  %v1749_v24 = vpop.f32.mrb[8].mxu1  ;;  %1408 = vpow2.f32 %v760_v15  ;;  %v696_v30 = vsub.f32 0.0, %v664_v19  ;;  %v662_v47 = vand.u32 2147483647, %v1753_v26  ;;  %v1786_v1 = vmul.f32 %v1354_v8, %v1685_v20 }
  0xfe   : > { %v1756_v28 = vpop.f32.mrb[9].mxu0  ;;  %v1758_v29 = vpop.f32.mrb[9].mxu1  ;;  %1410 = vpow2.f32 %v724_v16  ;;  %v1770_v42 = vadd.f32 %v1690_v22, %v575_v27  ;;  %v712_v56 = vsub.f32 0.0, %v680_v31  ;;  %v1782_v60 = vadd.f32 %v1690_v22, %v562_v34 }
  0xff   : > { %v1762_v35 = vpop.f32.mrb[10].mxu0  ;;  %v1764_v36 = vpop.f32.mrb[10].mxu1  ;;  %1412 = vpow2.f32 %v756_v18  ;;  %v734_v46 = vmul.f32 1.442695, %v696_v30  ;;  %v1788_v5 = vsub.f32 0.0, %v662_v47 }
 0x100   : > { %v1772_v43 = vpop.f32.mrb[11].mxu0  ;;  %v1774_v44 = vpop.f32.mrb[11].mxu1  ;;  %v1798_v27 = vmul.f32 1.442695, %v712_v56 }
 0x101   : > { %1414 = vpow2.f32 %v734_v46 }
 0x102   : > { %v1399_v50 = vpop.eup %1398 }
 0x103   : > { %v1401_v57 = vpop.eup %1400  ;;  %v804_v58 = vadd.f32 1.0, %v1399_v50  ;;  %v807_v59 = vmul.f32 -0.5, %v1399_v50  ;;  %v810_v3 = vand.u32 2147483647, %v1399_v50 }
 0x104   : > { %v1403_v61 = vpop.eup %1402  ;;  %v948_v62 = vadd.f32 1.0, %v1401_v57  ;;  %v951_v63 = vmul.f32 -0.5, %v1401_v57  ;;  %v954_v12 = vand.u32 2147483647, %v1401_v57 }
 0x105   : > { %v1405_v2 = vpop.eup %1404  ;;  %1416 = vlog2.f32 %v804_v58  ;;  %v786_v4 = vadd.f32 1.0, %v1403_v61  ;;  %v1790_v6 = vpop.f32.mrb[12].mxu0  ;;  %v808_v11 = vadd.f32 1.0, %v807_v59  ;;  %v789_v15 = vmul.f32 -0.5, %v1403_v61 }
 0x106   : > { %v1792_v10 = vpop.f32.mrb[12].mxu1  ;;  %1418 = vlog2.f32 %v948_v62  ;;  %v1794_v16 = vpop.f32.mrb[13].mxu0  ;;  %v952_v18 = vadd.f32 1.0, %v951_v63  ;;  %v930_v19 = vadd.f32 1.0, %v1405_v2  ;;  %v792_v47 = vand.u32 2147483647, %v1403_v61 }
 0x107   : > { %2261 = vst [vmem:[#allocation2_spill] sm:$0xff] %v1794_v16  ;;  %v1796_v17 = vpop.f32.mrb[13].mxu1  ;;  %v1407_v8 = vpop.eup %1406  ;;  %1420 = vlog2.f32 %v786_v4  ;;  %v790_v46 = vadd.f32 1.0, %v789_v15  ;;  %v933_v58 = vmul.f32 -0.5, %v1405_v2  ;;  %v1806_v59 = vmul.f32 %v1685_v20, %v1736_v9 }
 0x108   : > { %2262 = vst [vmem:[#allocation3_spill] sm:$0xff] %v1796_v17  ;;  %v1800_v30 = vpop.f32.mrb[14].mxu0  ;;  %v1802_v31 = vpop.f32.mrb[14].mxu1  ;;  %vm1812_vm2 = vcmp.lt.f32.partialorder %v810_v3, 0.0004427343  ;;  %1422 = vlog2.f32 %v930_v19  ;;  %v813_v54 = vadd.f32 1.0, %v1407_v8  ;;  %v809_v15 = vmul.f32 %v1399_v50, %v808_v11 }
 0x109   : > { %2263 = vst [vmem:[#allocation4_spill] sm:$0xff] %v1800_v30  ;;  %2264 = vst [vmem:[#allocation5_spill] sm:$0xff] %v1802_v31  ;;  %v1409_v34 = vpop.eup %1408  ;;  %v1808_v62 = vpop.f32.mrb[15].mxu0  ;;  %v936_v4 = vand.u32 2147483647, %v1405_v2  ;;  %v816_v51 = vmul.f32 -0.5, %v1407_v8  ;;  %v953_v3 = vmul.f32 %v1401_v57, %v952_v18  ;;  %v791_v14 = vmul.f32 %v1403_v61, %v790_v46 }
 0x10a   : > { %2265 = vst [vmem:[#allocation6_spill] sm:$0xff] %v1808_v62  ;;  %v1810_v55 = vpop.f32.mrb[15].mxu1  ;;  %v1411_v63 = vpop.eup %1410  ;;  %vm1816_vm3 = vcmp.lt.f32.partialorder %v954_v12, 0.0004427343  ;;  %v934_v9 = vadd.f32 1.0, %v933_v58  ;;  %1424 = vlog2.f32 %v813_v54  ;;  %v957_v37 = vadd.f32 1.0, %v1409_v34 }
 0x10b   : > { %2266 = vst [vmem:[#allocation7_spill] sm:$0xff] %v1810_v55  ;;  %v819_v41 = vand.u32 2147483647, %v1407_v8  ;;  %v1413_v0 = vpop.eup %1412  ;;  %v817_v40 = vadd.f32 1.0, %v816_v51  ;;  %v960_v25 = vmul.f32 -0.5, %v1409_v34  ;;  %v795_v19 = vadd.f32 1.0, %v1411_v63 }
 0x10c   : > { %vm1820_vm4 = vcmp.lt.f32.partialorder %v792_v47, 0.0004427343  ;;  %v1824_v62 = vpop.eup %1414  ;;  %vm1826_vm5 = vcmp.lt.f32.partialorder %v936_v4, 0.0004427343  ;;  %1426 = vlog2.f32 %v957_v37  ;;  %v963_v12 = vand.u32 2147483647, %v1409_v34 }
 0x10d   : > { %v961_v11 = vadd.f32 1.0, %v960_v25  ;;  %v798_v54 = vmul.f32 -0.5, %v1411_v63  ;;  %v935_v51 = vmul.f32 %v1405_v2, %v934_v9  ;;  %1428 = vlog2.f32 %v795_v19 }
 0x10e   : > { %v801_v58 = vand.u32 2147483647, %v1411_v63  ;;  %v939_v57 = vadd.f32 1.0, %v1413_v0  ;;  %v818_v18 = vmul.f32 %v1407_v8, %v817_v40  ;;  %vm1830_vm6 = vcmp.lt.f32.partialorder %v819_v41, 0.0004427343 }
 0x10f   : > { %v1417_v61 = vpop.eup %1416  ;;  %v799_v47 = vadd.f32 1.0, %v798_v54  ;;  %v942_v31 = vmul.f32 -0.5, %v1413_v0  ;;  %v945_v17 = vand.u32 2147483647, %v1413_v0  ;;  %v840_v25 = vadd.f32 1.0, %v1824_v62 }
 0x110   : > { %v1419_v4 = vpop.eup %1418  ;;  %v806_v30 = vmul.f32 0.6931472, %v1417_v61  ;;  %1430 = vlog2.f32 %v939_v57  ;;  %v962_v2 = vmul.f32 %v1409_v34, %v961_v11  ;;  %vm1835_vm7 = vcmp.lt.f32.partialorder %v963_v12, 0.0004427343 }
 0x111   : > { %v1421_v37 = vpop.eup %1420  ;;  %v950_v16 = vmul.f32 0.6931472, %v1419_v4  ;;  %v943_v40 = vadd.f32 1.0, %v942_v31  ;;  %vm1841_vm8 = vcmp.lt.f32.partialorder %v801_v58, 0.0004427343  ;;  %1432 = vlog2.f32 %v840_v25 }
 0x112   : > { %v812_v41 = vsel %vm1812_vm2, %v809_v15, %v806_v30  ;;  %v788_v8 = vmul.f32 0.6931472, %v1421_v37  ;;  %v843_v54 = vmul.f32 -0.5, %v1824_v62  ;;  %v1423_v57 = vpop.eup %1422  ;;  %v2281_v61 = vmax.f32 %v1697_v32, 0.0 }
 0x113   : > { %v956_v11 = vsel %vm1816_vm3, %v953_v3, %v950_v16  ;;  %v800_v12 = vmul.f32 %v1411_v63, %v799_v47  ;;  %v846_v31 = vand.u32 2147483647, %v1824_v62  ;;  %v2282_v30 = vmax.f32 %v1700_v33, 0.0 }
 0x114   : > { %v1076_v34 = vadd.f32 %v812_v41, %v2281_v61  ;;  %v794_v15 = vsel %vm1820_vm4, %v791_v14, %v788_v8  ;;  %v932_v58 = vmul.f32 0.6931472, %v1423_v57  ;;  %vm1855_vm9 = vcmp.lt.f32.partialorder %v945_v17, 0.0004427343  ;;  %v1425_v25 = vpop.eup %1424 }
 0x115   : > { %v1092_v56 = vadd.f32 %v956_v11, %v2282_v30  ;;  %v2285_v37 = vmax.f32 %v1705_v38, 0.0  ;;  %v944_v16 = vmul.f32 %v1413_v0, %v943_v40  ;;  %v844_v63 = vadd.f32 1.0, %v843_v54 }
 0x116   : > { %1434 = vtanh.f32 %v1076_v34  ;;  %v938_v3 = vsel %vm1826_vm5, %v935_v51, %v932_v58  ;;  %v815_v47 = vmul.f32 0.6931472, %v1425_v25  ;;  %v730_v55 = vmul.f32 1.442695, %v1788_v5  ;;  %v1427_v14 = vpop.eup %1426 }
 0x117   : > { %v1074_v45 = vadd.f32 %v794_v15, %v2285_v37  ;;  %1436 = vtanh.f32 %v1092_v56  ;;  %v2286_v17 = vmax.f32 %v1708_v39, 0.0  ;;  %vm1866_vm10 = vcmp.lt.f32.partialorder %v846_v31, 0.0004427343  ;;  %v1429_v40 = vpop.eup %1428 }
 0x118   : > { %v2289_v57 = vand.u32 2147483647, %v1770_v42  ;;  %v821_v50 = vsel %vm1830_vm6, %v818_v18, %v815_v47  ;;  %v959_v51 = vmul.f32 0.6931472, %v1427_v14  ;;  %v665_v5 = vand.u32 2147483647, %v1782_v60 }
 0x119   : > { %1438 = vtanh.f32 %v1074_v45  ;;  %v1090_v41 = vadd.f32 %v938_v3, %v2286_v17  ;;  %v2290_v54 = vmax.f32 %v1717_v48, 0.0  ;;  %v797_v34 = vmul.f32 0.6931472, %v1429_v40 }
 0x11a   : > { %v710_v0 = vsub.f32 0.0, %v2289_v57  ;;  %1440 = vpow2.f32 %v1798_v27  ;;  %v1431_v31 = vpop.eup %1430  ;;  %v965_v30 = vsel %vm1835_vm7, %v962_v2, %v959_v51  ;;  %v697_v56 = vsub.f32 0.0, %v665_v5 }
 0x11b   : > { %1442 = vtanh.f32 %v1090_v41  ;;  %v1077_v61 = vadd.f32 %v821_v50, %v2290_v54  ;;  %v1882_v18 = vadd.f32 %v1690_v22, %v1786_v1  ;;  %v2291_v27 = vmax.f32 %v1720_v49, 0.0  ;;  %v1433_v25 = vpop.eup %1432 }
 0x11c   : > { %v762_v11 = vmul.f32 1.442695, %v710_v0  ;;  %1444 = vpow2.f32 %v730_v55  ;;  %v803_v15 = vsel %vm1841_vm8, %v800_v12, %v797_v34  ;;  %v941_v58 = vmul.f32 0.6931472, %v1431_v31 }
 0x11d   : > { %1446 = vtanh.f32 %v1077_v61  ;;  %v1093_v46 = vadd.f32 %v965_v30, %v2291_v27  ;;  %v2292_v37 = vmax.f32 %v1723_v52, 0.0  ;;  %v845_v2 = vmul.f32 %v1824_v62, %v844_v63 }
 0x11e   : > { %1448 = vpow2.f32 %v762_v11  ;;  %v736_v45 = vmul.f32 1.442695, %v697_v56  ;;  %v947_v1 = vsel %vm1855_vm9, %v944_v16, %v941_v58  ;;  %v842_v3 = vmul.f32 0.6931472, %v1433_v25 }
 0x11f   : > { %v1075_v9 = vadd.f32 %v803_v15, %v2292_v37  ;;  %1450 = vtanh.f32 %v1093_v46  ;;  %v681_v47 = vand.u32 2147483647, %v1882_v18  ;;  %v2293_v19 = vmax.f32 %v1726_v53, 0.0 }
 0x120   : > { %v1899_v55 = vadd.f32 %v1690_v22, %v1806_v59  ;;  %v576_v62 = vmul.f32 %v1685_v20, %v1739_v13  ;;  %v1435_v63 = vpop.eup %1434  ;;  %v848_v4 = vsel %vm1866_vm10, %v845_v2, %v842_v3  ;;  %v2294_v17 = vmax.f32 %v1734_v7, 0.0 }
 0x121   : > { %1452 = vtanh.f32 %v1075_v9  ;;  %v1091_v12 = vadd.f32 %v947_v1, %v2293_v19  ;;  %v713_v16 = vsub.f32 0.0, %v681_v47  ;;  %v1437_v14 = vpop.eup %1436  ;;  %v1140_v59 = vmul.f32 %v1435_v63, %v1697_v32 }
 0x122   : > { %1454 = vpow2.f32 %v736_v45  ;;  %v1080_v13 = vadd.f32 %v848_v4, %v2294_v17  ;;  %v1156_v57 = vmul.f32 %v1437_v14, %v1700_v33  ;;  %v663_v40 = vand.u32 2147483647, %v1899_v55 }
 0x123   : > { %1456 = vtanh.f32 %v1091_v12  ;;  %v1439_v41 = vpop.eup %1438  ;;  %v768_v0 = vmul.f32 1.442695, %v713_v16  ;;  %v1916_v8 = vadd.f32 %v1690_v22, %v576_v62  ;;  %1172 = vst [vmem:[%s1906_s9 + $0x10] sm:$0xff] %v1140_v59  ;;  %v565_v34 = vmul.f32 %v1747_v23, %v1685_v20 }
 0x124   : > { %v1441_v50 = vpop.eup %1440  ;;  %v1138_v51 = vmul.f32 %v1439_v41, %v1705_v38  ;;  %1458 = vtanh.f32 %v1080_v13  ;;  %1188 = vst [vmem:[%s1906_s9 + $0x90] sm:$0xff] %v1156_v57  ;;  %v695_v61 = vsub.f32 0.0, %v663_v40  ;;  %v648_v27 = vmax.f32 %v1745_v21, 0.0 }
 0x125   : > { %v1443_v32 = vpop.eup %1442  ;;  %v984_v5 = vadd.f32 1.0, %v1441_v50  ;;  %1460 = vpow2.f32 %v768_v0  ;;  %v679_v38 = vand.u32 2147483647, %v1916_v8  ;;  %v987_v46 = vmul.f32 -0.5, %v1441_v50 }
 0x126   : > { %v1445_v54 = vpop.eup %1444  ;;  %1170 = vst [vmem:[%s1906_s9] sm:$0xff] %v1138_v51  ;;  %v1154_v33 = vmul.f32 %v1443_v32, %v1708_v39  ;;  %v630_v15 = vmax.f32 %v1753_v26, 0.0  ;;  %v732_v25 = vmul.f32 1.442695, %v695_v61  ;;  %v646_v2 = vmax.f32 %v1770_v42, 0.0 }
 0x127   : > { %v1447_v11 = vpop.eup %1446  ;;  %1462 = vlog2.f32 %v984_v5  ;;  %v822_v31 = vadd.f32 1.0, %v1445_v54  ;;  %v825_v58 = vmul.f32 -0.5, %v1445_v54  ;;  %v581_v45 = vmul.f32 %v1749_v24, %v1685_v20 }
 0x128   : > { %v1449_v30 = vpop.eup %1448  ;;  %1186 = vst [vmem:[%s1906_s9 + $0x80] sm:$0xff] %v1154_v33  ;;  %v1141_v56 = vmul.f32 %v1447_v11, %v1717_v48  ;;  %v1934_v48 = vadd.f32 %v1690_v22, %v565_v34  ;;  %v711_v19 = vsub.f32 0.0, %v679_v38  ;;  %v988_v62 = vadd.f32 1.0, %v987_v46 }
 0x129   : > { %v1451_v39 = vpop.eup %1450  ;;  %1464 = vlog2.f32 %v822_v31  ;;  %v966_v23 = vadd.f32 1.0, %v1449_v30  ;;  %v969_v47 = vmul.f32 -0.5, %v1449_v30  ;;  %v828_v63 = vand.u32 2147483647, %v1445_v54 }
 0x12a   : > { %1173 = vst [vmem:[%s1906_s9 + $0x18] sm:$0xff] %v1141_v56  ;;  %v1157_v9 = vmul.f32 %v1451_v39, %v1720_v49  ;;  %v990_v49 = vand.u32 2147483647, %v1441_v50  ;;  %v826_v14 = vadd.f32 1.0, %v825_v58  ;;  %v633_v24 = vmax.f32 %v1782_v60, 0.0 }
 0x12b   : > { %v1453_v37 = vpop.eup %1452  ;;  %1466 = vlog2.f32 %v966_v23  ;;  %v764_v13 = vmul.f32 1.442695, %v711_v19  ;;  %v970_v0 = vadd.f32 1.0, %v969_v47  ;;  %v668_v40 = vand.u32 2147483647, %v1934_v48 }
 0x12c   : > { %v1938_v1 = vpop.eup %1454  ;;  %v1139_v3 = vmul.f32 %v1453_v37, %v1723_v52  ;;  %1189 = vst [vmem:[%s1906_s9 + $0x98] sm:$0xff] %v1157_v9  ;;  %1468 = vpow2.f32 %v732_v25  ;;  %v972_v52 = vand.u32 2147483647, %v1449_v30  ;;  %v989_v51 = vmul.f32 %v1441_v50, %v988_v62 }
 0x12d   : > { %v1457_v12 = vpop.eup %1456  ;;  %v849_v4 = vadd.f32 1.0, %v1938_v1  ;;  %v852_v17 = vmul.f32 -0.5, %v1938_v1  ;;  %vm1955_vm11 = vcmp.lt.f32.partialorder %v990_v49, 0.0004427343  ;;  %vm1959_vm12 = vcmp.lt.f32.partialorder %v828_v63, 0.0004427343 }
 0x12e   : > { %1171 = vst [vmem:[%s1906_s9 + $0x8] sm:$0xff] %v1139_v3  ;;  %v1155_v16 = vmul.f32 %v1457_v12, %v1726_v53  ;;  %v1459_v59 = vpop.eup %1458  ;;  %v1953_v53 = vadd.f32 %v1690_v22, %v581_v45  ;;  %v700_v34 = vsub.f32 0.0, %v668_v40  ;;  %vm1966_vm13 = vcmp.lt.f32.partialorder %v972_v52, 0.0004427343 }
 0x12f   : > { %1470 = vlog2.f32 %v849_v4  ;;  %v1947_v41 = vpop.eup %1460  ;;  %v1144_v57 = vmul.f32 %v1459_v59, %v1734_v7  ;;  %v827_v7 = vmul.f32 %v1445_v54, %v826_v14  ;;  %v853_v38 = vadd.f32 1.0, %v852_v17 }
 0x130   : > { %1187 = vst [vmem:[%s1906_s9 + $0x88] sm:$0xff] %v1155_v16  ;;  %v993_v33 = vadd.f32 1.0, %v1947_v41  ;;  %1472 = vpow2.f32 %v764_v13  ;;  %v684_v11 = vand.u32 2147483647, %v1953_v53  ;;  %v971_v46 = vmul.f32 %v1449_v30, %v970_v0 }
 0x131   : > { %v1463_v61 = vpop.eup %1462  ;;  %1176 = vst [vmem:[%s1906_s9 + $0x30] sm:$0xff] %v1144_v57  ;;  %v742_v39 = vmul.f32 1.442695, %v700_v34  ;;  %v563_v58 = vmul.f32 %v1685_v20, %v1756_v28  ;;  %v579_v54 = vmul.f32 %v1685_v20, %v1758_v29  ;;  %v996_v37 = vmul.f32 -0.5, %v1947_v41 }
 0x132   : > { %v986_v31 = vmul.f32 0.6931472, %v1463_v61  ;;  %1474 = vlog2.f32 %v993_v33  ;;  %v716_v9 = vsub.f32 0.0, %v684_v11  ;;  %v855_v30 = vand.u32 2147483647, %v1938_v1 }
 0x133   : > { %v1465_v56 = vpop.eup %1464  ;;  %1476 = vpow2.f32 %v742_v39  ;;  %v1981_v47 = vadd.f32 %v1690_v22, %v563_v58  ;;  %v854_v19 = vmul.f32 %v1938_v1, %v853_v38  ;;  %v566_v12 = vmul.f32 %v1762_v35, %v1685_v20 }
 0x134   : > { %v992_v23 = vsel %vm1955_vm11, %v989_v51, %v986_v31  ;;  %v824_v25 = vmul.f32 0.6931472, %v1465_v56  ;;  %v1994_v63 = vadd.f32 %v1690_v22, %v579_v54  ;;  %v997_v14 = vadd.f32 1.0, %v996_v37 }
 0x135   : > { %v1467_v45 = vpop.eup %1466  ;;  %v1096_v3 = vadd.f32 %v992_v23, %v648_v27  ;;  %v666_v49 = vand.u32 2147483647, %v1981_v47  ;;  %v774_v59 = vmul.f32 1.442695, %v716_v9  ;;  %vm856_vm14 = vcmp.lt.f32.partialorder %v855_v30, 0.0004427343 }
 0x136   : > { %v830_v28 = vsel %vm1959_vm12, %v827_v7, %v824_v25  ;;  %v968_v29 = vmul.f32 0.6931472, %v1467_v45  ;;  %v1988_v62 = vpop.eup %1468  ;;  %v2003_v13 = vadd.f32 %v1690_v22, %v566_v12  ;;  %v649_v40 = vmax.f32 %v1882_v18, 0.0 }
 0x137   : > { %1478 = vtanh.f32 %v1096_v3  ;;  %v1078_v27 = vadd.f32 %v830_v28, %v630_v15  ;;  %v831_v1 = vadd.f32 1.0, %v1988_v62  ;;  %v698_v17 = vsub.f32 0.0, %v666_v49 }
 0x138   : > { %v974_v16 = vsel %vm1966_vm13, %v971_v46, %v968_v29  ;;  %v999_v15 = vand.u32 2147483647, %v1947_v41  ;;  %v682_v51 = vand.u32 2147483647, %v1994_v63  ;;  %v998_v5 = vmul.f32 %v1947_v41, %v997_v14 }
 0x139   : > { %v1471_v4 = vpop.eup %1470  ;;  %1480 = vtanh.f32 %v1078_v27  ;;  %v1094_v35 = vadd.f32 %v974_v16, %v646_v2  ;;  %v834_v33 = vmul.f32 -0.5, %v1988_v62  ;;  %v738_v34 = vmul.f32 1.442695, %v698_v17 }
 0x13a   : > { %v851_v52 = vmul.f32 0.6931472, %v1471_v4  ;;  %1482 = vlog2.f32 %v831_v1  ;;  %v2005_v57 = vpop.eup %1472  ;;  %v714_v11 = vsub.f32 0.0, %v682_v51  ;;  %vm1000_vm15 = vcmp.lt.f32.partialorder %v999_v15, 0.0004427343 }
 0x13b   : > { %1484 = vtanh.f32 %v1094_v35  ;;  %v975_v61 = vadd.f32 1.0, %v2005_v57  ;;  %v631_v31 = vmax.f32 %v1899_v55, 0.0  ;;  %v669_v50 = vand.u32 2147483647, %v2003_v13 }
 0x13c   : > { %v857_v0 = vsel %vm856_vm14, %v854_v19, %v851_v52  ;;  %v1475_v32 = vpop.eup %1474  ;;  %1486 = vpow2.f32 %v774_v59  ;;  %v636_v41 = vmax.f32 %v1934_v48, 0.0  ;;  %v837_v39 = vand.u32 2147483647, %v1988_v62 }
 0x13d   : > { %v1081_v2 = vadd.f32 %v857_v0, %v633_v24  ;;  %v995_v7 = vmul.f32 0.6931472, %v1475_v32  ;;  %v2016_v38 = vpop.eup %1476  ;;  %v647_v24 = vmax.f32 %v1916_v8, 0.0  ;;  %v770_v54 = vmul.f32 1.442695, %v714_v11 }
 0x13e   : > { %v876_v58 = vadd.f32 1.0, %v2016_v38  ;;  %v835_v25 = vadd.f32 1.0, %v834_v33  ;;  %v701_v37 = vsub.f32 0.0, %v669_v50  ;;  %v582_v9 = vmul.f32 %v1764_v36, %v1685_v20 }
 0x13f   : > { %1488 = vtanh.f32 %v1081_v2  ;;  %v1001_v56 = vsel %vm1000_vm15, %v998_v5, %v995_v7  ;;  %v978_v3 = vmul.f32 -0.5, %v2005_v57  ;;  %v564_v30 = vmul.f32 %v1685_v20, %v1772_v43 }
 0x140   : > { %1490 = vlog2.f32 %v975_v61  ;;  %v1097_v46 = vadd.f32 %v1001_v56, %v649_v40  ;;  %v652_v29 = vmax.f32 %v1953_v53, 0.0  ;;  %v744_v19 = vmul.f32 1.442695, %v701_v37 }
 0x141   : > { %v1479_v23 = vpop.eup %1478  ;;  %1492 = vpow2.f32 %v738_v34  ;;  %v2030_v12 = vadd.f32 %v1690_v22, %v582_v9  ;;  %v2036_v49 = vadd.f32 %v1690_v22, %v564_v30  ;;  %v836_v16 = vmul.f32 %v1988_v62, %v835_v25 }
 0x142   : > { %v1160_v45 = vmul.f32 %v1479_v23, %v1745_v21  ;;  %1494 = vtanh.f32 %v1097_v46  ;;  %v879_v21 = vmul.f32 -0.5, %v2016_v38  ;;  %vm838_vm0 = vcmp.lt.f32.partialorder %v837_v39, 0.0004427343 }
 0x143   : > { %v1481_v28 = vpop.eup %1480  ;;  %1496 = vlog2.f32 %v876_v58  ;;  %v685_v14 = vand.u32 2147483647, %v2030_v12  ;;  %v979_v59 = vadd.f32 1.0, %v978_v3  ;;  %v981_v17 = vand.u32 2147483647, %v2005_v57 }
 0x144   : > { %v1483_v27 = vpop.eup %1482  ;;  %1192 = vst [vmem:[%s1906_s9 + $0xb0] sm:$0xff] %v1160_v45  ;;  %v1142_v36 = vmul.f32 %v1481_v28, %v1753_v26  ;;  %1498 = vpow2.f32 %v770_v54  ;;  %v580_v26 = vmul.f32 %v1685_v20, %v1774_v44  ;;  %v882_v15 = vand.u32 2147483647, %v2016_v38 }
 0x145   : > { %v1485_v43 = vpop.eup %1484  ;;  %v833_v4 = vmul.f32 0.6931472, %v1483_v27  ;;  %1500 = vpow2.f32 %v744_v19  ;;  %v717_v0 = vsub.f32 0.0, %v685_v14  ;;  %v880_v51 = vadd.f32 1.0, %v879_v21 }
 0x146   : > { %1174 = vst [vmem:[%s1906_s9 + $0x20] sm:$0xff] %v1142_v36  ;;  %v1158_v1 = vmul.f32 %v1485_v43, %v1770_v42  ;;  %v2044_v35 = vpop.eup %1486  ;;  %v667_v32 = vand.u32 2147483647, %v2036_v49  ;;  %v634_v5 = vmax.f32 %v1981_v47, 0.0  ;;  %v2054_v61 = vadd.f32 %v1690_v22, %v580_v26 }
 0x147   : > { %v839_v52 = vsel %vm838_vm0, %v836_v16, %v833_v4  ;;  %v1020_v42 = vadd.f32 1.0, %v2044_v35  ;;  %v776_v33 = vmul.f32 1.442695, %v717_v0  ;;  %v980_v34 = vmul.f32 %v2005_v57, %v979_v59 }
 0x148   : > { %1190 = vst [vmem:[%s1906_s9 + $0xa0] sm:$0xff] %v1158_v1  ;;  %v1079_v40 = vadd.f32 %v839_v52, %v631_v31  ;;  %v650_v11 = vmax.f32 %v1994_v63, 0.0  ;;  %vm982_vm1 = vcmp.lt.f32.partialorder %v981_v17, 0.0004427343  ;;  %vm2059_vm2 = vcmp.lt.f32.partialorder %v882_v15, 0.0004427343 }
 0x149   : > { %v1489_v62 = vpop.eup %1488  ;;  %v881_v39 = vmul.f32 %v2016_v38, %v880_v51  ;;  %v699_v54 = vsub.f32 0.0, %v667_v32  ;;  %v1023_v37 = vmul.f32 -0.5, %v2044_v35  ;;  %v569_v30 = vmul.f32 %v1790_v6, %v1685_v20 }
 0x14a   : > { %v1491_v2 = vpop.eup %1490  ;;  %v1145_v44 = vmul.f32 %v1489_v62, %v1782_v60  ;;  %1502 = vtanh.f32 %v1079_v40  ;;  %v683_v60 = vand.u32 2147483647, %v2054_v61  ;;  %v1026_v6 = vand.u32 2147483647, %v2044_v35 }
 0x14b   : > { %v977_v7 = vmul.f32 0.6931472, %v1491_v2  ;;  %v1493_v31 = vpop.eup %1492  ;;  %1504 = vlog2.f32 %v1020_v42  ;;  %v740_v21 = vmul.f32 1.442695, %v699_v54  ;;  %v1024_v4 = vadd.f32 1.0, %v1023_v37 }
 0x14c   : > { %1177 = vst [vmem:[%s1906_s9 + $0x38] sm:$0xff] %v1145_v44  ;;  %v1495_v56 = vpop.eup %1494  ;;  %v858_v58 = vadd.f32 1.0, %v1493_v31  ;;  %1506 = vpow2.f32 %v776_v33  ;;  %v715_v3 = vsub.f32 0.0, %v683_v60  ;;  %v861_v38 = vmul.f32 -0.5, %v1493_v31 }
 0x14d   : > { %v983_v46 = vsel %vm982_vm1, %v980_v34, %v977_v7  ;;  %v1497_v57 = vpop.eup %1496  ;;  %v1161_v23 = vmul.f32 %v1495_v56, %v1882_v18  ;;  %v585_v18 = vmul.f32 %v1792_v10, %v1685_v20  ;;  %v864_v16 = vand.u32 2147483647, %v1493_v31 }
 0x14e   : > { %v1095_v25 = vadd.f32 %v983_v46, %v647_v24  ;;  %v1499_v9 = vpop.eup %1498  ;;  %v878_v45 = vmul.f32 0.6931472, %v1497_v57  ;;  %1508 = vlog2.f32 %v858_v58  ;;  %v772_v1 = vmul.f32 1.442695, %v715_v3  ;;  %v2310_v3 = vld [vmem:[#allocation3_spill] sm:$0xff] }
 0x14f   : > { %v1501_v28 = vpop.eup %1500  ;;  %1193 = vst [vmem:[%s1906_s9 + $0xb8] sm:$0xff] %v1161_v23  ;;  %v1002_v19 = vadd.f32 1.0, %v1499_v9  ;;  %v1005_v27 = vmul.f32 -0.5, %v1499_v9  ;;  %v862_v59 = vadd.f32 1.0, %v861_v38  ;;  %v1008_v10 = vand.u32 2147483647, %v1499_v9 }
 0x150   : > { %1510 = vtanh.f32 %v1095_v25  ;;  %v884_v24 = vsel %vm2059_vm2, %v881_v39, %v878_v45  ;;  %v885_v36 = vadd.f32 1.0, %v1501_v28  ;;  %v888_v14 = vmul.f32 -0.5, %v1501_v28 }
 0x151   : > { %v1084_v43 = vadd.f32 %v884_v24, %v636_v41  ;;  %1512 = vlog2.f32 %v1002_v19  ;;  %v2080_v26 = vadd.f32 %v1690_v22, %v569_v30  ;;  %v1006_v17 = vadd.f32 1.0, %v1005_v27  ;;  %v2303_v41 = vld [vmem:[#allocation2_spill] sm:$0xff] }
 0x152   : > { %1514 = vlog2.f32 %v885_v36  ;;  %v637_v15 = vmax.f32 %v2003_v13, 0.0  ;;  %v567_v0 = vmul.f32 %v1685_v20, %v2303_v41  ;;  %v891_v51 = vand.u32 2147483647, %v1501_v28 }
 0x153   : > { %1516 = vtanh.f32 %v1084_v43  ;;  %v2087_v42 = vadd.f32 %v1690_v22, %v585_v18  ;;  %v1025_v2 = vmul.f32 %v2044_v35, %v1024_v4  ;;  %v889_v44 = vadd.f32 1.0, %v888_v14  ;;  %v2311_v18 = vld [vmem:[#allocation4_spill] sm:$0xff] }
 0x154   : > { %v1503_v52 = vpop.eup %1502  ;;  %1518 = vpow2.f32 %v740_v21  ;;  %v672_v33 = vand.u32 2147483647, %v2080_v26  ;;  %vm1027_vm3 = vcmp.lt.f32.partialorder %v1026_v6, 0.0004427343  ;;  %v863_v34 = vmul.f32 %v1493_v31, %v862_v59 }
 0x155   : > { %v1505_v62 = vpop.eup %1504  ;;  %v1143_v40 = vmul.f32 %v1503_v52, %v1899_v55  ;;  %1520 = vpow2.f32 %v772_v1  ;;  %vm2094_vm4 = vcmp.lt.f32.partialorder %v864_v16, 0.0004427343  ;;  %vm2098_vm5 = vcmp.lt.f32.partialorder %v1008_v10, 0.0004427343  ;;  %v2312_v16 = vld [vmem:[#allocation5_spill] sm:$0xff] }
 0x156   : > { %v1022_v32 = vmul.f32 0.6931472, %v1505_v62  ;;  %v2091_v7 = vpop.eup %1506  ;;  %v1007_v56 = vmul.f32 %v1499_v9, %v1006_v17  ;;  %v2104_v46 = vadd.f32 %v1690_v22, %v567_v0  ;;  %v704_v54 = vsub.f32 0.0, %v672_v33  ;;  %v1591_v62 = vld [vmem:[%s2259_s3] ss:$0 sm:$0xff] }
 0x157   : > { %1175 = vst [vmem:[%s1906_s9 + $0x28] sm:$0xff] %v1143_v40  ;;  %v1029_v35 = vadd.f32 1.0, %v2091_v7  ;;  %v688_v57 = vand.u32 2147483647, %v2087_v42  ;;  %v890_v25 = vmul.f32 %v1501_v28, %v889_v44  ;;  %vm2110_vm6 = vcmp.lt.f32.partialorder %v891_v51, 0.0004427343 }
 0x158   : > { %v1509_v50 = vpop.eup %1508  ;;  %v1028_v60 = vsel %vm1027_vm3, %v1025_v2, %v1022_v32  ;;  %v750_v45 = vmul.f32 1.442695, %v704_v54  ;;  %v1032_v19 = vmul.f32 -0.5, %v2091_v7  ;;  %v670_v43 = vand.u32 2147483647, %v2104_v46 }
 0x159   : > { %v1100_v31 = vadd.f32 %v1028_v60, %v652_v29  ;;  %v860_v58 = vmul.f32 0.6931472, %v1509_v50  ;;  %1522 = vlog2.f32 %v1029_v35  ;;  %v2119_v29 = vld [vmem:[%s2258_s2] ss:$0 sm:$0xff]  ;;  %v720_v21 = vsub.f32 0.0, %v688_v57 }
 0x15a   : > { %v1511_v39 = vpop.eup %1510  ;;  %v570_v24 = vmul.f32 %v2119_v29, %v2311_v18  ;;  %v586_v14 = vmul.f32 %v2119_v29, %v2312_v16  ;;  %v1035_v52 = vand.u32 2147483647, %v2091_v7  ;;  %v1033_v41 = vadd.f32 1.0, %v1032_v19 }
 0x15b   : > { %v1159_v23 = vmul.f32 %v1511_v39, %v1916_v8  ;;  %v1513_v9 = vpop.eup %1512  ;;  %1524 = vtanh.f32 %v1100_v31  ;;  %v866_v22 = vsel %vm2094_vm4, %v863_v34, %v860_v58  ;;  %v583_v8 = vmul.f32 %v2119_v29, %v2310_v3  ;;  %v2315_v58 = vld [vmem:[#allocation6_spill] sm:$0xff] }
 0x15c   : > { %v1515_v30 = vpop.eup %1514  ;;  %v1082_v28 = vadd.f32 %v866_v22, %v634_v5  ;;  %v1004_v38 = vmul.f32 0.6931472, %v1513_v9  ;;  %1526 = vpow2.f32 %v750_v45  ;;  %v702_v51 = vsub.f32 0.0, %v670_v43 }
 0x15d   : > { %1191 = vst [vmem:[%s1906_s9 + $0xa8] sm:$0xff] %v1159_v23  ;;  %v1517_v27 = vpop.eup %1516  ;;  %v887_v36 = vmul.f32 0.6931472, %v1515_v30  ;;  %v2150_v40 = vadd.f32 %v1591_v62, %v583_v8  ;;  %v2152_v32 = vadd.f32 %v1591_v62, %v570_v24  ;;  %v653_v2 = vmax.f32 %v2030_v12, 0.0 }
 0x15e   : > { %v2130_v4 = vpop.eup %1518  ;;  %v1148_v6 = vmul.f32 %v1517_v27, %v1934_v48  ;;  %1528 = vtanh.f32 %v1082_v28  ;;  %v1010_v5 = vsel %vm2098_vm5, %v1007_v56, %v1004_v38  ;;  %vm2155_vm7 = vcmp.lt.f32.partialorder %v1035_v52, 0.0004427343 }
 0x15f   : > { %v2137_v1 = vpop.eup %1520  ;;  %v1098_v59 = vadd.f32 %v1010_v5, %v650_v11  ;;  %v893_v10 = vsel %vm2110_vm6, %v890_v25, %v887_v36  ;;  %v867_v17 = vadd.f32 1.0, %v2130_v4  ;;  %v782_v11 = vmul.f32 1.442695, %v720_v21  ;;  %v2316_v36 = vld [vmem:[#allocation7_spill] sm:$0xff] }
 0x160   : > { %1180 = vst [vmem:[%s1906_s9 + $0x50] sm:$0xff] %v1148_v6  ;;  %v1085_v48 = vadd.f32 %v893_v10, %v637_v15  ;;  %v1011_v0 = vadd.f32 1.0, %v2137_v1  ;;  %v746_v15 = vmul.f32 1.442695, %v702_v51  ;;  %v1034_v34 = vmul.f32 %v2091_v7, %v1033_v41 }
 0x161   : > { %1530 = vtanh.f32 %v1098_v59  ;;  %v870_v20 = vmul.f32 -0.5, %v2130_v4  ;;  %v686_v55 = vand.u32 2147483647, %v2150_v40  ;;  %v673_v56 = vand.u32 2147483647, %v2152_v32 }
 0x162   : > { %1532 = vtanh.f32 %v1085_v48  ;;  %v2163_v35 = vadd.f32 %v1591_v62, %v586_v14  ;;  %v568_v7 = vmul.f32 %v2119_v29, %v2315_v58  ;;  %v1014_v23 = vmul.f32 -0.5, %v2137_v1 }
 0x163   : > { %1534 = vlog2.f32 %v867_v17  ;;  %v1523_v33 = vpop.eup %1522  ;;  %v718_v31 = vsub.f32 0.0, %v686_v55  ;;  %v705_v25 = vsub.f32 0.0, %v673_v56  ;;  %v871_v28 = vadd.f32 1.0, %v870_v20 }
 0x164   : > { %1536 = vlog2.f32 %v1011_v0  ;;  %v1031_v60 = vmul.f32 0.6931472, %v1523_v33  ;;  %v689_v37 = vand.u32 2147483647, %v2163_v35  ;;  %v873_v38 = vand.u32 2147483647, %v2130_v4 }
 0x165   : > { %v1525_v50 = vpop.eup %1524  ;;  %1538 = vpow2.f32 %v782_v11  ;;  %v778_v3 = vmul.f32 1.442695, %v718_v31  ;;  %v752_v8 = vmul.f32 1.442695, %v705_v25  ;;  %v2178_v19 = vadd.f32 %v1591_v62, %v568_v7 }
 0x166   : > { %v1164_v39 = vmul.f32 %v1525_v50, %v1953_v53  ;;  %1540 = vpow2.f32 %v746_v15  ;;  %v2168_v54 = vpop.eup %1526  ;;  %v1037_v57 = vsel %vm2155_vm7, %v1034_v34, %v1031_v60  ;;  %v721_v30 = vsub.f32 0.0, %v689_v37 }
 0x167   : > { %v1101_v22 = vadd.f32 %v1037_v57, %v653_v2  ;;  %v912_v53 = vadd.f32 1.0, %v2168_v54  ;;  %v1015_v24 = vadd.f32 1.0, %v1014_v23  ;;  %v584_v21 = vmul.f32 %v2119_v29, %v2316_v36 }
 0x168   : > { %v1529_v9 = vpop.eup %1528  ;;  %1196 = vst [vmem:[%s1906_s9 + $0xd0] sm:$0xff] %v1164_v39  ;;  %v784_v27 = vmul.f32 1.442695, %v721_v30  ;;  %v635_v6 = vmax.f32 %v2036_v49, 0.0  ;;  %v1017_v5 = vand.u32 2147483647, %v2137_v1  ;;  %v872_v17 = vmul.f32 %v2130_v4, %v871_v28 }
 0x169   : > { %v1146_v45 = vmul.f32 %v1529_v9, %v1981_v47  ;;  %1542 = vtanh.f32 %v1101_v22  ;;  %v671_v59 = vand.u32 2147483647, %v2178_v19  ;;  %v2188_v10 = vadd.f32 %v1591_v62, %v584_v21 }
 0x16a   : > { %1544 = vlog2.f32 %v912_v53  ;;  %vm874_vm8 = vcmp.lt.f32.partialorder %v873_v38, 0.0004427343  ;;  %v1016_v0 = vmul.f32 %v2137_v1, %v1015_v24  ;;  %v651_v62 = vmax.f32 %v2054_v61, 0.0 }
 0x16b   : > { %v1531_v18 = vpop.eup %1530  ;;  %1178 = vst [vmem:[%s1906_s9 + $0x40] sm:$0xff] %v1146_v45  ;;  %1546 = vpow2.f32 %v778_v3  ;;  %vm1018_vm9 = vcmp.lt.f32.partialorder %v1017_v5, 0.0004427343  ;;  %v687_v33 = vand.u32 2147483647, %v2188_v10  ;;  %v640_v25 = vmax.f32 %v2080_v26, 0.0 }
 0x16c   : > { %v1533_v43 = vpop.eup %1532  ;;  %v1162_v47 = vmul.f32 %v1531_v18, %v1994_v63  ;;  %1548 = vpow2.f32 %v752_v8  ;;  %v915_v63 = vmul.f32 -0.5, %v2168_v54  ;;  %v918_v1 = vand.u32 2147483647, %v2168_v54 }
 0x16d   : > { %v1535_v16 = vpop.eup %1534  ;;  %v1149_v14 = vmul.f32 %v1533_v43, %v2003_v13  ;;  %1550 = vpow2.f32 %v784_v27  ;;  %v703_v13 = vsub.f32 0.0, %v671_v59  ;;  %v719_v31 = vsub.f32 0.0, %v687_v33 }
 0x16e   : > { %v1537_v52 = vpop.eup %1536  ;;  %1194 = vst [vmem:[%s1906_s9 + $0xc0] sm:$0xff] %v1162_v47  ;;  %v869_v29 = vmul.f32 0.6931472, %v1535_v16  ;;  %v916_v20 = vadd.f32 1.0, %v915_v63  ;;  %vm919_vm10 = vcmp.lt.f32.partialorder %v918_v1, 0.0004427343 }
 0x16f   : > { %v1539_v48 = vpop.eup %1538  ;;  %1181 = vst [vmem:[%s1906_s9 + $0x58] sm:$0xff] %v1149_v14  ;;  %v1013_v41 = vmul.f32 0.6931472, %v1537_v52  ;;  %v748_v55 = vmul.f32 1.442695, %v703_v13  ;;  %v656_v5 = vmax.f32 %v2087_v42, 0.0 }
 0x170   : > { %v2195_v11 = vpop.eup %1540  ;;  %v875_v51 = vsel %vm874_vm8, %v872_v17, %v869_v29  ;;  %v1056_v2 = vadd.f32 1.0, %v1539_v48  ;;  %v1059_v39 = vmul.f32 -0.5, %v1539_v48  ;;  %v917_v57 = vmul.f32 %v2168_v54, %v916_v20 }
 0x171   : > { %v1083_v44 = vadd.f32 %v875_v51, %v635_v6  ;;  %v1019_v15 = vsel %vm1018_vm9, %v1016_v0, %v1013_v41  ;;  %v894_v4 = vadd.f32 1.0, %v2195_v11  ;;  %v897_v22 = vmul.f32 -0.5, %v2195_v11 }
 0x172   : > { %v1099_v34 = vadd.f32 %v1019_v15, %v651_v62  ;;  %1552 = vlog2.f32 %v1056_v2  ;;  %v1060_v3 = vadd.f32 1.0, %v1059_v39  ;;  %v780_v54 = vmul.f32 1.442695, %v719_v31 }
 0x173   : > { %1554 = vtanh.f32 %v1083_v44  ;;  %v1543_v50 = vpop.eup %1542  ;;  %v1062_v8 = vand.u32 2147483647, %v1539_v48  ;;  %v898_v38 = vadd.f32 1.0, %v897_v22  ;;  %v900_v18 = vand.u32 2147483647, %v2195_v11 }
 0x174   : > { %1556 = vtanh.f32 %v1099_v34  ;;  %v1545_v60 = vpop.eup %1544  ;;  %v1165_v56 = vmul.f32 %v1543_v50, %v2030_v12  ;;  %v1061_v21 = vmul.f32 %v1539_v48, %v1060_v3  ;;  %v638_v52 = vmax.f32 %v2104_v46, 0.0 }
 0x175   : > { %1558 = vlog2.f32 %v894_v4  ;;  %v2202_v58 = vpop.eup %1546  ;;  %v914_v7 = vmul.f32 0.6931472, %v1545_v60  ;;  %vm1063_vm11 = vcmp.lt.f32.partialorder %v1062_v8, 0.0004427343  ;;  %v899_v41 = vmul.f32 %v2195_v11, %v898_v38 }
 0x176   : > { %1560 = vpow2.f32 %v748_v55  ;;  %v2205_v23 = vpop.eup %1548  ;;  %1197 = vst [vmem:[%s1906_s9 + $0xd8] sm:$0xff] %v1165_v56  ;;  %v1038_v37 = vadd.f32 1.0, %v2202_v58  ;;  %v1041_v24 = vmul.f32 -0.5, %v2202_v58  ;;  %vm901_vm12 = vcmp.lt.f32.partialorder %v900_v18, 0.0004427343 }
 0x177   : > { %v2210_v9 = vpop.eup %1550  ;;  %v920_v12 = vsel %vm919_vm10, %v917_v57, %v914_v7  ;;  %v921_v53 = vadd.f32 1.0, %v2205_v23  ;;  %v924_v43 = vmul.f32 -0.5, %v2205_v23  ;;  %v927_v62 = vand.u32 2147483647, %v2205_v23 }
 0x178   : > { %v1088_v45 = vadd.f32 %v920_v12, %v640_v25  ;;  %1562 = vlog2.f32 %v1038_v37  ;;  %v1065_v30 = vadd.f32 1.0, %v2210_v9  ;;  %v1068_v29 = vmul.f32 -0.5, %v2210_v9 }
 0x179   : > { %1564 = vlog2.f32 %v921_v53  ;;  %v1042_v0 = vadd.f32 1.0, %v1041_v24  ;;  %v925_v13 = vadd.f32 1.0, %v924_v43  ;;  %v654_v15 = vmax.f32 %v2150_v40, 0.0 }
 0x17a   : > { %1566 = vtanh.f32 %v1088_v45  ;;  %v1069_v4 = vadd.f32 1.0, %v1068_v29  ;;  %v641_v20 = vmax.f32 %v2152_v32, 0.0  ;;  %v1071_v1 = vand.u32 2147483647, %v2210_v9 }
 0x17b   : > { %1568 = vlog2.f32 %v1065_v30  ;;  %v1043_v11 = vmul.f32 %v2202_v58, %v1042_v0  ;;  %v926_v60 = vmul.f32 %v2205_v23, %v925_v13  ;;  %vm928_vm14 = vcmp.lt.f32.partialorder %v927_v62, 0.0004427343 }
 0x17c   : > { %v1553_v28 = vpop.eup %1552  ;;  %1570 = vpow2.f32 %v780_v54  ;;  %v1070_v12 = vmul.f32 %v2210_v9, %v1069_v4  ;;  %v657_v53 = vmax.f32 %v2163_v35, 0.0  ;;  %vm1072_vm15 = vcmp.lt.f32.partialorder %v1071_v1, 0.0004427343 }
 0x17d   : > { %v1555_v27 = vpop.eup %1554  ;;  %v1058_v36 = vmul.f32 0.6931472, %v1553_v28 }
 0x17e   : > { %v1557_v47 = vpop.eup %1556  ;;  %v1147_v6 = vmul.f32 %v1555_v27, %v2036_v49  ;;  %v1044_v49 = vand.u32 2147483647, %v2202_v58  ;;  %v639_v27 = vmax.f32 %v2178_v19, 0.0 }
 0x17f   : > { %v1559_v16 = vpop.eup %1558  ;;  %v1163_v14 = vmul.f32 %v1557_v47, %v2054_v61  ;;  %v1064_v59 = vsel %vm1063_vm11, %v1061_v21, %v1058_v36 }
 0x180   : > { %v1561_v17 = vpop.eup %1560  ;;  %1179 = vst [vmem:[%s1906_s9 + $0x48] sm:$0xff] %v1147_v6  ;;  %v1104_v63 = vadd.f32 %v1064_v59, %v656_v5  ;;  %v896_v48 = vmul.f32 0.6931472, %v1559_v16  ;;  %vm1045_vm13 = vcmp.lt.f32.partialorder %v1044_v49, 0.0004427343 }
 0x181   : > { %1195 = vst [vmem:[%s1906_s9 + $0xc8] sm:$0xff] %v1163_v14  ;;  %v903_v51 = vadd.f32 1.0, %v1561_v17  ;;  %v906_v7 = vmul.f32 -0.5, %v1561_v17  ;;  %v909_v54 = vand.u32 2147483647, %v1561_v17 }
 0x182   : > { %1572 = vtanh.f32 %v1104_v63  ;;  %v902_v61 = vsel %vm901_vm12, %v899_v41, %v896_v48  ;;  %v1563_v2 = vpop.eup %1562  ;;  %v655_v63 = vmax.f32 %v2188_v10, 0.0 }
 0x183   : > { %v1086_v44 = vadd.f32 %v902_v61, %v638_v52  ;;  %1574 = vlog2.f32 %v903_v51  ;;  %v1565_v33 = vpop.eup %1564  ;;  %v1040_v34 = vmul.f32 0.6931472, %v1563_v2  ;;  %v907_v3 = vadd.f32 1.0, %v906_v7 }
 0x184   : > { %v1567_v55 = vpop.eup %1566  ;;  %v923_v50 = vmul.f32 0.6931472, %v1565_v33  ;;  %vm910_vm0 = vcmp.lt.f32.partialorder %v909_v54, 0.0004427343 }
 0x185   : > { %1576 = vtanh.f32 %v1086_v44  ;;  %v1569_v56 = vpop.eup %1568  ;;  %v1152_v39 = vmul.f32 %v1567_v55, %v2080_v26  ;;  %v1046_v31 = vsel %vm1045_vm13, %v1043_v11, %v1040_v34  ;;  %v908_v38 = vmul.f32 %v1561_v17, %v907_v3 }
 0x186   : > { %v1571_v57 = vpop.eup %1570  ;;  %v1102_v25 = vadd.f32 %v1046_v31, %v654_v15  ;;  %v929_v58 = vsel %vm928_vm14, %v926_v60, %v923_v50  ;;  %v1067_v37 = vmul.f32 0.6931472, %v1569_v56 }
 0x187   : > { %1184 = vst [vmem:[%s1906_s9 + $0x70] sm:$0xff] %v1152_v39  ;;  %v1089_v22 = vadd.f32 %v929_v58, %v641_v20  ;;  %v1047_v45 = vadd.f32 1.0, %v1571_v57  ;;  %v1050_v18 = vmul.f32 -0.5, %v1571_v57 }
 0x188   : > { %1578 = vtanh.f32 %v1102_v25  ;;  %v1073_v23 = vsel %vm1072_vm15, %v1070_v12, %v1067_v37 }
 0x189   : > { %1580 = vtanh.f32 %v1089_v22  ;;  %v1105_v26 = vadd.f32 %v1073_v23, %v657_v53  ;;  %v1051_v47 = vadd.f32 1.0, %v1050_v18 }
 0x18a   : > { %1582 = vlog2.f32 %v1047_v45 }
 0x18b   : > { %1584 = vtanh.f32 %v1105_v26  ;;  %v1052_v29 = vmul.f32 %v1571_v57, %v1051_v47 }
 0x18c   : > { %v1573_v8 = vpop.eup %1572 }
 0x18d   : > { %v1575_v30 = vpop.eup %1574  ;;  %v1168_v9 = vmul.f32 %v1573_v8, %v2087_v42  ;;  %v1053_v42 = vand.u32 2147483647, %v1571_v57 }
 0x18e   : > { %v905_v28 = vmul.f32 0.6931472, %v1575_v30 }
 0x18f   : > { %v1577_v24 = vpop.eup %1576  ;;  %1200 = vst [vmem:[%s1906_s9 + $0xf0] sm:$0xff] %v1168_v9  ;;  %vm1054_vm1 = vcmp.lt.f32.partialorder %v1053_v42, 0.0004427343 }
 0x190   : > { %v1150_v36 = vmul.f32 %v1577_v24, %v2104_v46  ;;  %v911_v21 = vsel %vm910_vm0, %v908_v38, %v905_v28 }
 0x191   : > { %v1087_v43 = vadd.f32 %v911_v21, %v639_v27 }
 0x192   : > { %1182 = vst [vmem:[%s1906_s9 + $0x60] sm:$0xff] %v1150_v36  ;;  %v1579_v6 = vpop.eup %1578 }
 0x193   : > { %1586 = vtanh.f32 %v1087_v43  ;;  %v1581_v5 = vpop.eup %1580  ;;  %v1166_v16 = vmul.f32 %v1579_v6, %v2150_v40 }
 0x194   : > { %v1583_v14 = vpop.eup %1582  ;;  %v1153_v59 = vmul.f32 %v1581_v5, %v2152_v32 }
 0x195   : > { %v1585_v52 = vpop.eup %1584  ;;  %1198 = vst [vmem:[%s1906_s9 + $0xe0] sm:$0xff] %v1166_v16  ;;  %v1049_v46 = vmul.f32 0.6931472, %v1583_v14 }
 0x196   : > { %1185 = vst [vmem:[%s1906_s9 + $0x78] sm:$0xff] %v1153_v59  ;;  %v1169_v17 = vmul.f32 %v1585_v52, %v2163_v35 }
 0x197   : > { %v1055_v48 = vsel %vm1054_vm1, %v1052_v29, %v1049_v46 }
 0x198   : > { %1201 = vst [vmem:[%s1906_s9 + $0xf8] sm:$0xff] %v1169_v17  ;;  %v1103_v41 = vadd.f32 %v1055_v48, %v655_v63 }
 0x19a   : > { %1588 = vtanh.f32 %v1103_v41 }
 0x19d   : > { %v1587_v40 = vpop.eup %1586 }
 0x19e   : > { %v1151_v0 = vmul.f32 %v1587_v40, %v2178_v19 }
 0x1a0   : > { %1183 = vst [vmem:[%s1906_s9 + $0x68] sm:$0xff] %v1151_v0 }
 0x1a4   : > { %v1589_v32 = vpop.eup %1588 }
 0x1a5   : > { %v1167_v49 = vmul.f32 %v1589_v32, %v2188_v10 }
 0x1a7   : > { %1199 = vst [vmem:[%s1906_s9 + $0xe8] sm:$0xff] %v1167_v49 }
 0x1a8 PF: > { %s14_s15 = sadd.s32 1, %s1598_s15  }
 0x1a9   : > { %p11_p4 = scmp.ge.s32.totalorder %s14_s15, 4  }
 0x1ab   :  { %13 = sbr.rel (!%p11_p4) target bundleno = 1 (0x1), region = 66 }

</bundles_post_ra>
